<compile_context>
chip_gen: v7x
topology: tpu7x:2x2x1
jax: 0.10.0
libtpu: 0.0.40
codegen_flags: <defaults>
</compile_context>

<pallas_src>
import functools

import jax
import jax.numpy as jnp
from jax.experimental import pallas as pl
from jax.experimental.pallas import tpu as pltpu


# ----------------------------------------------------------------------------
# Fused kernel: embedding gather + [num_layers x LSTM] + output Linear.
# Gate order follows PyTorch: [i, f, g, o] along the 4H axis.
# ----------------------------------------------------------------------------
def make_lstm_stack_kernel(num_layers, T, B, H, num_codes):
    def kernel(*refs):
        idx_ref = refs[0]                                # (T*B, 1) int32, time-major
        emb_ref = refs[1]                                # (num_codes, E) f32
        layer_refs = refs[2:2 + 3 * num_layers]          # per layer: W_ih, W_hh, bias
        wout_ref = refs[2 + 3 * num_layers]              # (H, C_pad) bf16
        bout_ref = refs[3 + 3 * num_layers]              # (1, C_pad) f32
        logits_ref, hn_ref, cn_ref = refs[4 + 3 * num_layers:]

        # ---- Fused embedding lookup: one-hot @ table on the MXU (vectorized,
        # no dynamic per-row loads, no HBM round trip for the (B,T,E) activation).
        idx = idx_ref[...]                               # (T*B, 1)
        code_iota = jax.lax.broadcasted_iota(jnp.int32, (T * B, num_codes), 1)
        onehot = (idx == code_iota).astype(jnp.float32)  # (T*B, num_codes)
        cur = jnp.dot(onehot, emb_ref[...],
                      preferred_element_type=jnp.float32)  # (T*B, E), exact rows

        for l in range(num_layers):
            wih = layer_refs[3 * l][...]                 # (E_in, 4H) bf16, pre-T
            whh = layer_refs[3 * l + 1][...]             # (H,   4H) f32,  pre-T
            b = layer_refs[3 * l + 2][...]               # (1,   4H) f32 = b_ih+b_hh

            # Hoisted non-recurrent projection: one bf16 MXU matmul over all
            # timesteps (f32 accumulation).
            gx = jnp.dot(cur.astype(wih.dtype), wih,
                         preferred_element_type=jnp.float32) + b   # (T*B, 4H)

            # reset(): zero initial hidden state (h0/c0 inputs dropped).
            h = jnp.zeros((B, H), jnp.float32)
            c = jnp.zeros((B, H), jnp.float32)

            # Fully unrolled recurrence (T small & static); only h @ W_hh is
            # serial. Per-timestep h kept in vregs, no scratch stores.
            hs = []
            for t in range(T):
                gates = gx[t * B:(t + 1) * B, :] + jnp.dot(
                    h, whh, preferred_element_type=jnp.float32)    # (B, 4H)
                sig = jax.nn.sigmoid(gates)              # full 128-lane EUP call
                th = jnp.tanh(gates)                     # full 128-lane EUP call
                i_g = sig[:, 0 * H:1 * H]
                f_g = sig[:, 1 * H:2 * H]
                g_g = th[:, 2 * H:3 * H]
                o_g = sig[:, 3 * H:4 * H]
                c = f_g * c + i_g * g_g
                h = o_g * jnp.tanh(c)
                hs.append(h)

            # Final hidden state written once per layer (resident outputs).
            hn_ref[l] = h.astype(hn_ref.dtype)
            cn_ref[l] = c.astype(cn_ref.dtype)

            # Next-layer input / Linear input, assembled in registers.
            cur = jnp.concatenate(hs, axis=0)            # (T*B, H)

        # Output Linear over all timesteps at once; C padded to 128 lanes so
        # the store is a full-lane slab (padding stripped in the wrapper).
        logits_ref[...] = (jnp.dot(cur.astype(wout_ref.dtype), wout_ref[...],
                                   preferred_element_type=jnp.float32)
                           + bout_ref[...]).astype(logits_ref.dtype)

    return kernel


def lstm_stack_forward(idx_tm, emb_table, layer_weights, w_out_p, b_out_p,
                       *, T, B, H, E, C_pad, num_layers, num_codes):
    kernel = make_lstm_stack_kernel(num_layers, T, B, H, num_codes)

    inputs = [idx_tm, emb_table]
    in_specs = [pl.BlockSpec(idx_tm.shape, lambda i: (0, 0)),
                pl.BlockSpec(emb_table.shape, lambda i: (0, 0))]
    for (wih, whh, bias) in layer_weights:
        inputs += [wih, whh, bias]
        in_specs += [pl.BlockSpec(wih.shape, lambda i: (0, 0)),
                     pl.BlockSpec(whh.shape, lambda i: (0, 0)),
                     pl.BlockSpec(bias.shape, lambda i: (0, 0))]
    inputs += [w_out_p, b_out_p]
    in_specs += [pl.BlockSpec(w_out_p.shape, lambda i: (0, 0)),
                 pl.BlockSpec(b_out_p.shape, lambda i: (0, 0))]

    out_shapes = (
        jax.ShapeDtypeStruct((T * B, C_pad), jnp.float32),
        jax.ShapeDtypeStruct((num_layers, B, H), jnp.float32),
        jax.ShapeDtypeStruct((num_layers, B, H), jnp.float32),
    )
    out_specs = (
        pl.BlockSpec((T * B, C_pad), lambda i: (0, 0)),
        pl.BlockSpec((num_layers, B, H), lambda i: (0, 0, 0)),
        pl.BlockSpec((num_layers, B, H), lambda i: (0, 0, 0)),
    )

    # Advisory cost hint for the XLA scheduler around this custom call.
    flops = 2 * T * B * num_codes * E
    e_in = E
    for _ in range(num_layers):
        flops += 2 * T * B * e_in * 4 * H          # hoisted X @ W_ih
        flops += 2 * T * B * H * 4 * H             # recurrent h @ W_hh
        e_in = H
    flops += 2 * T * B * H * C_pad                 # output Linear
    transcendentals = num_layers * T * B * 9 * H   # sigmoid+tanh(gates)+tanh(c)
    bytes_accessed = sum(int(a.size) * a.dtype.itemsize for a in inputs)
    bytes_accessed += (T * B * C_pad + 2 * num_layers * B * H) * 4
    cost = pl.CostEstimate(flops=int(flops),
                           transcendentals=int(transcendentals),
                           bytes_accessed=int(bytes_accessed))

    return pl.pallas_call(
        kernel,
        grid=(1,),
        in_specs=in_specs,
        out_specs=out_specs,
        out_shape=out_shapes,
        compiler_params=pltpu.CompilerParams(
            dimension_semantics=("arbitrary",)),
        cost_estimate=cost,
    )(*inputs)


# ----------------------------------------------------------------------------
# Full forward pass (equivalent to LatentPredictor.forward after reset()).
# ----------------------------------------------------------------------------
@functools.partial(jax.jit, static_argnames=("num_layers",))
def latent_predictor_forward(chunked_latent, params, num_layers):
    B, T = chunked_latent.shape
    num_codes, E = params["embedding"].shape
    H = params["w_hh_0"].shape[1]
    C = params["w_out"].shape[0]
    C_pad = max(128, ((C + 127) // 128) * 128)

    # Time-major flat indices: row r = t*B + b  <->  chunked_latent[b, t].
    # (Tiny int op; replaces the old (B,T,E) gather + transpose in the wrapper.)
    idx_tm = chunked_latent.astype(jnp.int32).T.reshape(T * B, 1)

    # Pre-transpose weights once; bf16 for the bulk (non-recurrent) MXU matmuls,
    # f32 for everything on the recurrent path.
    layer_weights = []
    for l in range(num_layers):
        layer_weights.append((
            params[f"w_ih_{l}"].T.astype(jnp.bfloat16),   # (E_in, 4H)
            params[f"w_hh_{l}"].T.astype(jnp.float32),    # (H,   4H)
            params[f"bias_{l}"].astype(jnp.float32),      # (1,   4H)
        ))

    # Lane-dense output weights (pad num_codes -> multiple of 128), bf16.
    w_out_p = jnp.zeros((H, C_pad), jnp.bfloat16).at[:, :C].set(
        params["w_out"].T.astype(jnp.bfloat16))
    b_out_p = jnp.zeros((1, C_pad), jnp.float32).at[:, :C].set(params["b_out"])

    logits_flat, h_n, c_n = lstm_stack_forward(
        idx_tm, params["embedding"].astype(jnp.float32), layer_weights,
        w_out_p, b_out_p,
        T=T, B=B, H=H, E=E, C_pad=C_pad, num_layers=num_layers,
        num_codes=num_codes)

    logits = logits_flat[:, :C].reshape(T, B, C).transpose(1, 0, 2)  # (B, T, C)
    return logits, (h_n, c_n)


# ----------------------------------------------------------------------------
# Pure-JAX f32 reference (for correctness check of the Pallas kernel).
# ----------------------------------------------------------------------------
def reference_forward(chunked_latent, params, num_layers):
    emb = jnp.take(params["embedding"], chunked_latent, axis=0)   # (B, T, E)
    x = jnp.transpose(emb, (1, 0, 2)).astype(jnp.float32)
    h_n, c_n = [], []
    for layer in range(num_layers):
        w_ih, w_hh = params[f"w_ih_{layer}"], params[f"w_hh_{layer}"]
        bias = params[f"bias_{layer}"]
        h = params[f"h0_{layer}"]
        c = params[f"c0_{layer}"]
        H = h.shape[-1]

        def step(carry, x_t):
            h, c = carry
            gates = x_t @ w_ih.T + h @ w_hh.T + bias
            i = jax.nn.sigmoid(gates[:, :H])
            f = jax.nn.sigmoid(gates[:, H:2 * H])
            g = jnp.tanh(gates[:, 2 * H:3 * H])
            o = jax.nn.sigmoid(gates[:, 3 * H:])
            c = f * c + i * g
            h = o * jnp.tanh(c)
            return (h, c), h

        (h_last, c_last), x = jax.lax.scan(step, (h, c), x)
        h_n.append(h_last)
        c_n.append(c_last)
    logits = x @ params["w_out"].T + params["b_out"]              # (T, B, C)
    return (jnp.transpose(logits, (1, 0, 2)),
            (jnp.stack(h_n, 0), jnp.stack(c_n, 0)))


# ----------------------------------------------------------------------------
# Deterministic parameter init (PyTorch-style uniform(-1/sqrt(H), 1/sqrt(H))).
# ----------------------------------------------------------------------------
def init_params(key, num_layers, hidden_dim, num_codes, embedding_dim, batch):
    params = {}
    k = 1.0 / jnp.sqrt(hidden_dim)
    keys = jax.random.split(key, 3 + 4 * num_layers)
    params["embedding"] = jax.random.normal(
        keys[0], (num_codes, embedding_dim), jnp.float32)
    for layer in range(num_layers):
        in_dim = embedding_dim if layer == 0 else hidden_dim
        kk = keys[3 + 4 * layer: 3 + 4 * (layer + 1)]
        params[f"w_ih_{layer}"] = jax.random.uniform(
            kk[0], (4 * hidden_dim, in_dim), jnp.float32, -k, k)
        params[f"w_hh_{layer}"] = jax.random.uniform(
            kk[1], (4 * hidden_dim, hidden_dim), jnp.float32, -k, k)
        b_ih = jax.random.uniform(kk[2], (4 * hidden_dim,), jnp.float32, -k, k)
        b_hh = jax.random.uniform(kk[3], (4 * hidden_dim,), jnp.float32, -k, k)
        params[f"bias_{layer}"] = (b_ih + b_hh).reshape(1, 4 * hidden_dim)
        # reset(): zero initial hidden state (used by the reference only;
        # the kernel zero-initializes h/c internally).
        params[f"h0_{layer}"] = jnp.zeros((batch, hidden_dim), jnp.float32)
        params[f"c0_{layer}"] = jnp.zeros((batch, hidden_dim), jnp.float32)
    params["w_out"] = jax.random.uniform(
        keys[1], (num_codes, hidden_dim), jnp.float32, -k, k)
    params["b_out"] = jax.random.uniform(
        keys[2], (num_codes,), jnp.float32, -k, k).reshape(1, num_codes)
    return params


if __name__ == "__main__":
    # Module config: LatentPredictor(num_layers=2, hidden_dim=32,
    #                categorical_dim=2, num_digits_per_chunk=4, embedding_dim=64)
    num_layers = 2
    hidden_dim = 32
    categorical_dim = 2
    num_digits_per_chunk = 4
    num_codes = categorical_dim ** num_digits_per_chunk   # 16
    embedding_dim = 64
    batch, seq = 2, 8

    key = jax.random.PRNGKey(0)
    k_param, k_data = jax.random.split(key)
    params = init_params(k_param, num_layers, hidden_dim, num_codes,
                         embedding_dim, batch)

    # (int32 indices; semantically identical to PyTorch's int64 for the lookup)
    chunked_latent = jax.random.randint(
        k_data, (batch, seq), 0, num_codes, dtype=jnp.int32)

    logits, (h_n, c_n) = latent_predictor_forward(
        chunked_latent, params, num_layers)
    logits = jax.block_until_ready(logits)

    ref_logits, (ref_hn, ref_cn) = reference_forward(
        chunked_latent, params, num_layers)

    # Tolerances relaxed vs. pure f32 because the bulk (non-recurrent) matmuls
    # run with bf16 operands on the MXU (f32 accumulation), per perf feedback.
    assert logits.shape == (batch, seq, num_codes), logits.shape
    assert jnp.allclose(logits, ref_logits, atol=5e-2, rtol=5e-2), \
        float(jnp.max(jnp.abs(logits - ref_logits)))
    assert jnp.allclose(h_n, ref_hn, atol=5e-2, rtol=5e-2), \
        float(jnp.max(jnp.abs(h_n - ref_hn)))
    assert jnp.allclose(c_n, ref_cn, atol=5e-2, rtol=5e-2), \
        float(jnp.max(jnp.abs(c_n - ref_cn)))

    print("KERNEL_OK")
</pallas_src>

<mosaic_0001>
module attributes {stable_mosaic.version = 11 : i64} {
  func.func @kernel(%arg0: i32, %arg1: memref<16x1xi32, #tpu.memory_space<vmem>>, %arg2: memref<16x64xf32, #tpu.memory_space<vmem>>, %arg3: memref<64x128xbf16, #tpu.memory_space<vmem>>, %arg4: memref<32x128xf32, #tpu.memory_space<vmem>>, %arg5: memref<1x128xf32, #tpu.memory_space<vmem>>, %arg6: memref<32x128xbf16, #tpu.memory_space<vmem>>, %arg7: memref<32x128xf32, #tpu.memory_space<vmem>>, %arg8: memref<1x128xf32, #tpu.memory_space<vmem>>, %arg9: memref<32x128xbf16, #tpu.memory_space<vmem>>, %arg10: memref<1x128xf32, #tpu.memory_space<vmem>>, %arg11: memref<16x128xf32, #tpu.memory_space<vmem>>, %arg12: memref<2x2x32xf32, #tpu.memory_space<vmem>>, %arg13: memref<2x2x32xf32, #tpu.memory_space<vmem>>) attributes {dimension_semantics = [#tpu.dimension_semantics<arbitrary>], iteration_bounds = array<i64: 1>, scalar_prefetch = 0 : i64, scratch_operands = 0 : i64, tpu.core_type = #tpu.core_type<tc>, window_params = [{pipeline_mode = #tpu.pipeline_mode<synchronous>, transform_indices = @transform_0, window_bounds = array<i64: 16, 1>}, {pipeline_mode = #tpu.pipeline_mode<synchronous>, transform_indices = @transform_1, window_bounds = array<i64: 16, 64>}, {pipeline_mode = #tpu.pipeline_mode<synchronous>, transform_indices = @transform_2, window_bounds = array<i64: 64, 128>}, {pipeline_mode = #tpu.pipeline_mode<synchronous>, transform_indices = @transform_3, window_bounds = array<i64: 32, 128>}, {pipeline_mode = #tpu.pipeline_mode<synchronous>, transform_indices = @transform_4, window_bounds = array<i64: 1, 128>}, {pipeline_mode = #tpu.pipeline_mode<synchronous>, transform_indices = @transform_5, window_bounds = array<i64: 32, 128>}, {pipeline_mode = #tpu.pipeline_mode<synchronous>, transform_indices = @transform_6, window_bounds = array<i64: 32, 128>}, {pipeline_mode = #tpu.pipeline_mode<synchronous>, transform_indices = @transform_7, window_bounds = array<i64: 1, 128>}, {pipeline_mode = #tpu.pipeline_mode<synchronous>, transform_indices = @transform_8, window_bounds = array<i64: 32, 128>}, {pipeline_mode = #tpu.pipeline_mode<synchronous>, transform_indices = @transform_9, window_bounds = array<i64: 1, 128>}, {pipeline_mode = #tpu.pipeline_mode<synchronous>, transform_indices = @transform_10, window_bounds = array<i64: 16, 128>}, {pipeline_mode = #tpu.pipeline_mode<synchronous>, transform_indices = @transform_11, window_bounds = array<i64: 2, 2, 32>}, {pipeline_mode = #tpu.pipeline_mode<synchronous>, transform_indices = @transform_12, window_bounds = array<i64: 2, 2, 32>}]} {
    %c0 = arith.constant 0 : index
    %c0_0 = arith.constant 0 : index
    %0 = vector.load %arg1[%c0, %c0_0] : memref<16x1xi32, #tpu.memory_space<vmem>>, vector<16x1xi32>
    %1 = tpu.iota {dimensions = array<i32: 1>} : vector<16x16xi32>
    %2 = vector.broadcast %0 : vector<16x1xi32> to vector<16x16xi32>
    %3 = arith.cmpi eq, %2, %1 : vector<16x16xi32>
    %4 = arith.extui %3 : vector<16x16xi1> to vector<16x16xi32>
    %5 = arith.sitofp %4 : vector<16x16xi32> to vector<16x16xf32>
    %c0_1 = arith.constant 0 : index
    %c0_2 = arith.constant 0 : index
    %6 = vector.load %arg2[%c0_1, %c0_2] : memref<16x64xf32, #tpu.memory_space<vmem>>, vector<16x64xf32>
    %cst = arith.constant dense<0.000000e+00> : vector<16x64xf32>
    %7 = tpu.matmul %5, %6, %cst {dimension_numbers = #tpu.dot_dimension_numbers<[1], [0], [0], [1], [0, 0, 1, 1], [], []>} : vector<16x16xf32>, vector<16x64xf32>, vector<16x64xf32> -> vector<16x64xf32>
    %c0_3 = arith.constant 0 : index
    %c0_4 = arith.constant 0 : index
    %8 = vector.load %arg3[%c0_3, %c0_4] : memref<64x128xbf16, #tpu.memory_space<vmem>>, vector<64x128xbf16>
    %c0_5 = arith.constant 0 : index
    %c0_6 = arith.constant 0 : index
    %9 = vector.load %arg4[%c0_5, %c0_6] : memref<32x128xf32, #tpu.memory_space<vmem>>, vector<32x128xf32>
    %c0_7 = arith.constant 0 : index
    %c0_8 = arith.constant 0 : index
    %10 = vector.load %arg5[%c0_7, %c0_8] : memref<1x128xf32, #tpu.memory_space<vmem>>, vector<1x128xf32>
    %11 = arith.truncf %7 : vector<16x64xf32> to vector<16x64xbf16>
    %cst_9 = arith.constant dense<0.000000e+00> : vector<16x128xf32>
    %12 = tpu.matmul %11, %8, %cst_9 {dimension_numbers = #tpu.dot_dimension_numbers<[1], [0], [0], [1], [0, 0, 1, 1], [], []>} : vector<16x64xbf16>, vector<64x128xbf16>, vector<16x128xf32> -> vector<16x128xf32>
    %13 = vector.broadcast %10 : vector<1x128xf32> to vector<16x128xf32>
    %14 = arith.addf %12, %13 : vector<16x128xf32>
    %cst_10 = arith.constant 0.000000e+00 : f32
    %15 = vector.broadcast %cst_10 : f32 to vector<2x32xf32>
    %cst_11 = arith.constant 0.000000e+00 : f32
    %16 = vector.broadcast %cst_11 : f32 to vector<2x32xf32>
    %17 = vector.extract_strided_slice %14 {offsets = [0, 0], sizes = [2, 128], strides = [1, 1]} : vector<16x128xf32> to vector<2x128xf32>
    %cst_12 = arith.constant dense<0.000000e+00> : vector<2x128xf32>
    %18 = tpu.matmul %15, %9, %cst_12 {dimension_numbers = #tpu.dot_dimension_numbers<[1], [0], [0], [1], [0, 0, 1, 1], [], []>} : vector<2x32xf32>, vector<32x128xf32>, vector<2x128xf32> -> vector<2x128xf32>
    %19 = arith.addf %17, %18 : vector<2x128xf32>
    %20 = arith.negf %19 : vector<2x128xf32>
    %21 = math.exp %20 : vector<2x128xf32>
    %cst_13 = arith.constant 1.000000e+00 : f32
    %22 = vector.broadcast %cst_13 : f32 to vector<2x128xf32>
    %23 = arith.addf %22, %21 : vector<2x128xf32>
    %24 = arith.divf %22, %23 : vector<2x128xf32>
    %25 = math.tanh %19 : vector<2x128xf32>
    %26 = vector.extract_strided_slice %24 {offsets = [0, 0], sizes = [2, 32], strides = [1, 1]} : vector<2x128xf32> to vector<2x32xf32>
    %27 = vector.extract_strided_slice %24 {offsets = [0, 32], sizes = [2, 32], strides = [1, 1]} : vector<2x128xf32> to vector<2x32xf32>
    %28 = vector.extract_strided_slice %25 {offsets = [0, 64], sizes = [2, 32], strides = [1, 1]} : vector<2x128xf32> to vector<2x32xf32>
    %29 = vector.extract_strided_slice %24 {offsets = [0, 96], sizes = [2, 32], strides = [1, 1]} : vector<2x128xf32> to vector<2x32xf32>
    %30 = arith.mulf %27, %16 : vector<2x32xf32>
    %31 = arith.mulf %26, %28 : vector<2x32xf32>
    %32 = arith.addf %30, %31 : vector<2x32xf32>
    %33 = math.tanh %32 : vector<2x32xf32>
    %34 = arith.mulf %29, %33 : vector<2x32xf32>
    %35 = vector.extract_strided_slice %14 {offsets = [2, 0], sizes = [2, 128], strides = [1, 1]} : vector<16x128xf32> to vector<2x128xf32>
    %cst_14 = arith.constant dense<0.000000e+00> : vector<2x128xf32>
    %36 = tpu.matmul %34, %9, %cst_14 {dimension_numbers = #tpu.dot_dimension_numbers<[1], [0], [0], [1], [0, 0, 1, 1], [], []>} : vector<2x32xf32>, vector<32x128xf32>, vector<2x128xf32> -> vector<2x128xf32>
    %37 = arith.addf %35, %36 : vector<2x128xf32>
    %38 = arith.negf %37 : vector<2x128xf32>
    %39 = math.exp %38 : vector<2x128xf32>
    %cst_15 = arith.constant 1.000000e+00 : f32
    %40 = vector.broadcast %cst_15 : f32 to vector<2x128xf32>
    %41 = arith.addf %40, %39 : vector<2x128xf32>
    %42 = arith.divf %40, %41 : vector<2x128xf32>
    %43 = math.tanh %37 : vector<2x128xf32>
    %44 = vector.extract_strided_slice %42 {offsets = [0, 0], sizes = [2, 32], strides = [1, 1]} : vector<2x128xf32> to vector<2x32xf32>
    %45 = vector.extract_strided_slice %42 {offsets = [0, 32], sizes = [2, 32], strides = [1, 1]} : vector<2x128xf32> to vector<2x32xf32>
    %46 = vector.extract_strided_slice %43 {offsets = [0, 64], sizes = [2, 32], strides = [1, 1]} : vector<2x128xf32> to vector<2x32xf32>
    %47 = vector.extract_strided_slice %42 {offsets = [0, 96], sizes = [2, 32], strides = [1, 1]} : vector<2x128xf32> to vector<2x32xf32>
    %48 = arith.mulf %45, %32 : vector<2x32xf32>
    %49 = arith.mulf %44, %46 : vector<2x32xf32>
    %50 = arith.addf %48, %49 : vector<2x32xf32>
    %51 = math.tanh %50 : vector<2x32xf32>
    %52 = arith.mulf %47, %51 : vector<2x32xf32>
    %53 = vector.extract_strided_slice %14 {offsets = [4, 0], sizes = [2, 128], strides = [1, 1]} : vector<16x128xf32> to vector<2x128xf32>
    %cst_16 = arith.constant dense<0.000000e+00> : vector<2x128xf32>
    %54 = tpu.matmul %52, %9, %cst_16 {dimension_numbers = #tpu.dot_dimension_numbers<[1], [0], [0], [1], [0, 0, 1, 1], [], []>} : vector<2x32xf32>, vector<32x128xf32>, vector<2x128xf32> -> vector<2x128xf32>
    %55 = arith.addf %53, %54 : vector<2x128xf32>
    %56 = arith.negf %55 : vector<2x128xf32>
    %57 = math.exp %56 : vector<2x128xf32>
    %cst_17 = arith.constant 1.000000e+00 : f32
    %58 = vector.broadcast %cst_17 : f32 to vector<2x128xf32>
    %59 = arith.addf %58, %57 : vector<2x128xf32>
    %60 = arith.divf %58, %59 : vector<2x128xf32>
    %61 = math.tanh %55 : vector<2x128xf32>
    %62 = vector.extract_strided_slice %60 {offsets = [0, 0], sizes = [2, 32], strides = [1, 1]} : vector<2x128xf32> to vector<2x32xf32>
    %63 = vector.extract_strided_slice %60 {offsets = [0, 32], sizes = [2, 32], strides = [1, 1]} : vector<2x128xf32> to vector<2x32xf32>
    %64 = vector.extract_strided_slice %61 {offsets = [0, 64], sizes = [2, 32], strides = [1, 1]} : vector<2x128xf32> to vector<2x32xf32>
    %65 = vector.extract_strided_slice %60 {offsets = [0, 96], sizes = [2, 32], strides = [1, 1]} : vector<2x128xf32> to vector<2x32xf32>
    %66 = arith.mulf %63, %50 : vector<2x32xf32>
    %67 = arith.mulf %62, %64 : vector<2x32xf32>
    %68 = arith.addf %66, %67 : vector<2x32xf32>
    %69 = math.tanh %68 : vector<2x32xf32>
    %70 = arith.mulf %65, %69 : vector<2x32xf32>
    %71 = vector.extract_strided_slice %14 {offsets = [6, 0], sizes = [2, 128], strides = [1, 1]} : vector<16x128xf32> to vector<2x128xf32>
    %cst_18 = arith.constant dense<0.000000e+00> : vector<2x128xf32>
    %72 = tpu.matmul %70, %9, %cst_18 {dimension_numbers = #tpu.dot_dimension_numbers<[1], [0], [0], [1], [0, 0, 1, 1], [], []>} : vector<2x32xf32>, vector<32x128xf32>, vector<2x128xf32> -> vector<2x128xf32>
    %73 = arith.addf %71, %72 : vector<2x128xf32>
    %74 = arith.negf %73 : vector<2x128xf32>
    %75 = math.exp %74 : vector<2x128xf32>
    %cst_19 = arith.constant 1.000000e+00 : f32
    %76 = vector.broadcast %cst_19 : f32 to vector<2x128xf32>
    %77 = arith.addf %76, %75 : vector<2x128xf32>
    %78 = arith.divf %76, %77 : vector<2x128xf32>
    %79 = math.tanh %73 : vector<2x128xf32>
    %80 = vector.extract_strided_slice %78 {offsets = [0, 0], sizes = [2, 32], strides = [1, 1]} : vector<2x128xf32> to vector<2x32xf32>
    %81 = vector.extract_strided_slice %78 {offsets = [0, 32], sizes = [2, 32], strides = [1, 1]} : vector<2x128xf32> to vector<2x32xf32>
    %82 = vector.extract_strided_slice %79 {offsets = [0, 64], sizes = [2, 32], strides = [1, 1]} : vector<2x128xf32> to vector<2x32xf32>
    %83 = vector.extract_strided_slice %78 {offsets = [0, 96], sizes = [2, 32], strides = [1, 1]} : vector<2x128xf32> to vector<2x32xf32>
    %84 = arith.mulf %81, %68 : vector<2x32xf32>
    %85 = arith.mulf %80, %82 : vector<2x32xf32>
    %86 = arith.addf %84, %85 : vector<2x32xf32>
    %87 = math.tanh %86 : vector<2x32xf32>
    %88 = arith.mulf %83, %87 : vector<2x32xf32>
    %89 = vector.extract_strided_slice %14 {offsets = [8, 0], sizes = [2, 128], strides = [1, 1]} : vector<16x128xf32> to vector<2x128xf32>
    %cst_20 = arith.constant dense<0.000000e+00> : vector<2x128xf32>
    %90 = tpu.matmul %88, %9, %cst_20 {dimension_numbers = #tpu.dot_dimension_numbers<[1], [0], [0], [1], [0, 0, 1, 1], [], []>} : vector<2x32xf32>, vector<32x128xf32>, vector<2x128xf32> -> vector<2x128xf32>
    %91 = arith.addf %89, %90 : vector<2x128xf32>
    %92 = arith.negf %91 : vector<2x128xf32>
    %93 = math.exp %92 : vector<2x128xf32>
    %cst_21 = arith.constant 1.000000e+00 : f32
    %94 = vector.broadcast %cst_21 : f32 to vector<2x128xf32>
    %95 = arith.addf %94, %93 : vector<2x128xf32>
    %96 = arith.divf %94, %95 : vector<2x128xf32>
    %97 = math.tanh %91 : vector<2x128xf32>
    %98 = vector.extract_strided_slice %96 {offsets = [0, 0], sizes = [2, 32], strides = [1, 1]} : vector<2x128xf32> to vector<2x32xf32>
    %99 = vector.extract_strided_slice %96 {offsets = [0, 32], sizes = [2, 32], strides = [1, 1]} : vector<2x128xf32> to vector<2x32xf32>
    %100 = vector.extract_strided_slice %97 {offsets = [0, 64], sizes = [2, 32], strides = [1, 1]} : vector<2x128xf32> to vector<2x32xf32>
    %101 = vector.extract_strided_slice %96 {offsets = [0, 96], sizes = [2, 32], strides = [1, 1]} : vector<2x128xf32> to vector<2x32xf32>
    %102 = arith.mulf %99, %86 : vector<2x32xf32>
    %103 = arith.mulf %98, %100 : vector<2x32xf32>
    %104 = arith.addf %102, %103 : vector<2x32xf32>
    %105 = math.tanh %104 : vector<2x32xf32>
    %106 = arith.mulf %101, %105 : vector<2x32xf32>
    %107 = vector.extract_strided_slice %14 {offsets = [10, 0], sizes = [2, 128], strides = [1, 1]} : vector<16x128xf32> to vector<2x128xf32>
    %cst_22 = arith.constant dense<0.000000e+00> : vector<2x128xf32>
    %108 = tpu.matmul %106, %9, %cst_22 {dimension_numbers = #tpu.dot_dimension_numbers<[1], [0], [0], [1], [0, 0, 1, 1], [], []>} : vector<2x32xf32>, vector<32x128xf32>, vector<2x128xf32> -> vector<2x128xf32>
    %109 = arith.addf %107, %108 : vector<2x128xf32>
    %110 = arith.negf %109 : vector<2x128xf32>
    %111 = math.exp %110 : vector<2x128xf32>
    %cst_23 = arith.constant 1.000000e+00 : f32
    %112 = vector.broadcast %cst_23 : f32 to vector<2x128xf32>
    %113 = arith.addf %112, %111 : vector<2x128xf32>
    %114 = arith.divf %112, %113 : vector<2x128xf32>
    %115 = math.tanh %109 : vector<2x128xf32>
    %116 = vector.extract_strided_slice %114 {offsets = [0, 0], sizes = [2, 32], strides = [1, 1]} : vector<2x128xf32> to vector<2x32xf32>
    %117 = vector.extract_strided_slice %114 {offsets = [0, 32], sizes = [2, 32], strides = [1, 1]} : vector<2x128xf32> to vector<2x32xf32>
    %118 = vector.extract_strided_slice %115 {offsets = [0, 64], sizes = [2, 32], strides = [1, 1]} : vector<2x128xf32> to vector<2x32xf32>
    %119 = vector.extract_strided_slice %114 {offsets = [0, 96], sizes = [2, 32], strides = [1, 1]} : vector<2x128xf32> to vector<2x32xf32>
    %120 = arith.mulf %117, %104 : vector<2x32xf32>
    %121 = arith.mulf %116, %118 : vector<2x32xf32>
    %122 = arith.addf %120, %121 : vector<2x32xf32>
    %123 = math.tanh %122 : vector<2x32xf32>
    %124 = arith.mulf %119, %123 : vector<2x32xf32>
    %125 = vector.extract_strided_slice %14 {offsets = [12, 0], sizes = [2, 128], strides = [1, 1]} : vector<16x128xf32> to vector<2x128xf32>
    %cst_24 = arith.constant dense<0.000000e+00> : vector<2x128xf32>
    %126 = tpu.matmul %124, %9, %cst_24 {dimension_numbers = #tpu.dot_dimension_numbers<[1], [0], [0], [1], [0, 0, 1, 1], [], []>} : vector<2x32xf32>, vector<32x128xf32>, vector<2x128xf32> -> vector<2x128xf32>
    %127 = arith.addf %125, %126 : vector<2x128xf32>
    %128 = arith.negf %127 : vector<2x128xf32>
    %129 = math.exp %128 : vector<2x128xf32>
    %cst_25 = arith.constant 1.000000e+00 : f32
    %130 = vector.broadcast %cst_25 : f32 to vector<2x128xf32>
    %131 = arith.addf %130, %129 : vector<2x128xf32>
    %132 = arith.divf %130, %131 : vector<2x128xf32>
    %133 = math.tanh %127 : vector<2x128xf32>
    %134 = vector.extract_strided_slice %132 {offsets = [0, 0], sizes = [2, 32], strides = [1, 1]} : vector<2x128xf32> to vector<2x32xf32>
    %135 = vector.extract_strided_slice %132 {offsets = [0, 32], sizes = [2, 32], strides = [1, 1]} : vector<2x128xf32> to vector<2x32xf32>
    %136 = vector.extract_strided_slice %133 {offsets = [0, 64], sizes = [2, 32], strides = [1, 1]} : vector<2x128xf32> to vector<2x32xf32>
    %137 = vector.extract_strided_slice %132 {offsets = [0, 96], sizes = [2, 32], strides = [1, 1]} : vector<2x128xf32> to vector<2x32xf32>
    %138 = arith.mulf %135, %122 : vector<2x32xf32>
    %139 = arith.mulf %134, %136 : vector<2x32xf32>
    %140 = arith.addf %138, %139 : vector<2x32xf32>
    %141 = math.tanh %140 : vector<2x32xf32>
    %142 = arith.mulf %137, %141 : vector<2x32xf32>
    %143 = vector.extract_strided_slice %14 {offsets = [14, 0], sizes = [2, 128], strides = [1, 1]} : vector<16x128xf32> to vector<2x128xf32>
    %cst_26 = arith.constant dense<0.000000e+00> : vector<2x128xf32>
    %144 = tpu.matmul %142, %9, %cst_26 {dimension_numbers = #tpu.dot_dimension_numbers<[1], [0], [0], [1], [0, 0, 1, 1], [], []>} : vector<2x32xf32>, vector<32x128xf32>, vector<2x128xf32> -> vector<2x128xf32>
    %145 = arith.addf %143, %144 : vector<2x128xf32>
    %146 = arith.negf %145 : vector<2x128xf32>
    %147 = math.exp %146 : vector<2x128xf32>
    %cst_27 = arith.constant 1.000000e+00 : f32
    %148 = vector.broadcast %cst_27 : f32 to vector<2x128xf32>
    %149 = arith.addf %148, %147 : vector<2x128xf32>
    %150 = arith.divf %148, %149 : vector<2x128xf32>
    %151 = math.tanh %145 : vector<2x128xf32>
    %152 = vector.extract_strided_slice %150 {offsets = [0, 0], sizes = [2, 32], strides = [1, 1]} : vector<2x128xf32> to vector<2x32xf32>
    %153 = vector.extract_strided_slice %150 {offsets = [0, 32], sizes = [2, 32], strides = [1, 1]} : vector<2x128xf32> to vector<2x32xf32>
    %154 = vector.extract_strided_slice %151 {offsets = [0, 64], sizes = [2, 32], strides = [1, 1]} : vector<2x128xf32> to vector<2x32xf32>
    %155 = vector.extract_strided_slice %150 {offsets = [0, 96], sizes = [2, 32], strides = [1, 1]} : vector<2x128xf32> to vector<2x32xf32>
    %156 = arith.mulf %153, %140 : vector<2x32xf32>
    %157 = arith.mulf %152, %154 : vector<2x32xf32>
    %158 = arith.addf %156, %157 : vector<2x32xf32>
    %159 = math.tanh %158 : vector<2x32xf32>
    %160 = arith.mulf %155, %159 : vector<2x32xf32>
    %c0_28 = arith.constant 0 : index
    %c0_29 = arith.constant 0 : index
    %c0_30 = arith.constant 0 : index
    %161 = vector.load %arg12[%c0_28, %c0_29, %c0_30] : memref<2x2x32xf32, #tpu.memory_space<vmem>>, vector<1x2x32xf32>
    %162 = vector.shape_cast %161 : vector<1x2x32xf32> to vector<2x32xf32>
    %163 = vector.shape_cast %160 : vector<2x32xf32> to vector<1x2x32xf32>
    tpu.vector_store %arg12[%c0_28, %c0_29, %c0_30], %163 {strides = array<i32>} : memref<2x2x32xf32, #tpu.memory_space<vmem>>, vector<1x2x32xf32>,
    %c0_31 = arith.constant 0 : index
    %c0_32 = arith.constant 0 : index
    %c0_33 = arith.constant 0 : index
    %164 = vector.load %arg13[%c0_31, %c0_32, %c0_33] : memref<2x2x32xf32, #tpu.memory_space<vmem>>, vector<1x2x32xf32>
    %165 = vector.shape_cast %164 : vector<1x2x32xf32> to vector<2x32xf32>
    %166 = vector.shape_cast %158 : vector<2x32xf32> to vector<1x2x32xf32>
    tpu.vector_store %arg13[%c0_31, %c0_32, %c0_33], %166 {strides = array<i32>} : memref<2x2x32xf32, #tpu.memory_space<vmem>>, vector<1x2x32xf32>,
    %167 = tpu.concatenate %34, %52, %70, %88, %106, %124, %142, %160 in 0 : vector<2x32xf32>, vector<2x32xf32>, vector<2x32xf32>, vector<2x32xf32>, vector<2x32xf32>, vector<2x32xf32>, vector<2x32xf32>, vector<2x32xf32> -> vector<16x32xf32>
    %c0_34 = arith.constant 0 : index
    %c0_35 = arith.constant 0 : index
    %168 = vector.load %arg6[%c0_34, %c0_35] : memref<32x128xbf16, #tpu.memory_space<vmem>>, vector<32x128xbf16>
    %c0_36 = arith.constant 0 : index
    %c0_37 = arith.constant 0 : index
    %169 = vector.load %arg7[%c0_36, %c0_37] : memref<32x128xf32, #tpu.memory_space<vmem>>, vector<32x128xf32>
    %c0_38 = arith.constant 0 : index
    %c0_39 = arith.constant 0 : index
    %170 = vector.load %arg8[%c0_38, %c0_39] : memref<1x128xf32, #tpu.memory_space<vmem>>, vector<1x128xf32>
    %171 = arith.truncf %167 : vector<16x32xf32> to vector<16x32xbf16>
    %cst_40 = arith.constant dense<0.000000e+00> : vector<16x128xf32>
    %172 = tpu.matmul %171, %168, %cst_40 {dimension_numbers = #tpu.dot_dimension_numbers<[1], [0], [0], [1], [0, 0, 1, 1], [], []>} : vector<16x32xbf16>, vector<32x128xbf16>, vector<16x128xf32> -> vector<16x128xf32>
    %173 = vector.broadcast %170 : vector<1x128xf32> to vector<16x128xf32>
    %174 = arith.addf %172, %173 : vector<16x128xf32>
    %cst_41 = arith.constant 0.000000e+00 : f32
    %175 = vector.broadcast %cst_41 : f32 to vector<2x32xf32>
    %cst_42 = arith.constant 0.000000e+00 : f32
    %176 = vector.broadcast %cst_42 : f32 to vector<2x32xf32>
    %177 = vector.extract_strided_slice %174 {offsets = [0, 0], sizes = [2, 128], strides = [1, 1]} : vector<16x128xf32> to vector<2x128xf32>
    %cst_43 = arith.constant dense<0.000000e+00> : vector<2x128xf32>
    %178 = tpu.matmul %175, %169, %cst_43 {dimension_numbers = #tpu.dot_dimension_numbers<[1], [0], [0], [1], [0, 0, 1, 1], [], []>} : vector<2x32xf32>, vector<32x128xf32>, vector<2x128xf32> -> vector<2x128xf32>
    %179 = arith.addf %177, %178 : vector<2x128xf32>
    %180 = arith.negf %179 : vector<2x128xf32>
    %181 = math.exp %180 : vector<2x128xf32>
    %cst_44 = arith.constant 1.000000e+00 : f32
    %182 = vector.broadcast %cst_44 : f32 to vector<2x128xf32>
    %183 = arith.addf %182, %181 : vector<2x128xf32>
    %184 = arith.divf %182, %183 : vector<2x128xf32>
    %185 = math.tanh %179 : vector<2x128xf32>
    %186 = vector.extract_strided_slice %184 {offsets = [0, 0], sizes = [2, 32], strides = [1, 1]} : vector<2x128xf32> to vector<2x32xf32>
    %187 = vector.extract_strided_slice %184 {offsets = [0, 32], sizes = [2, 32], strides = [1, 1]} : vector<2x128xf32> to vector<2x32xf32>
    %188 = vector.extract_strided_slice %185 {offsets = [0, 64], sizes = [2, 32], strides = [1, 1]} : vector<2x128xf32> to vector<2x32xf32>
    %189 = vector.extract_strided_slice %184 {offsets = [0, 96], sizes = [2, 32], strides = [1, 1]} : vector<2x128xf32> to vector<2x32xf32>
    %190 = arith.mulf %187, %176 : vector<2x32xf32>
    %191 = arith.mulf %186, %188 : vector<2x32xf32>
    %192 = arith.addf %190, %191 : vector<2x32xf32>
    %193 = math.tanh %192 : vector<2x32xf32>
    %194 = arith.mulf %189, %193 : vector<2x32xf32>
    %195 = vector.extract_strided_slice %174 {offsets = [2, 0], sizes = [2, 128], strides = [1, 1]} : vector<16x128xf32> to vector<2x128xf32>
    %cst_45 = arith.constant dense<0.000000e+00> : vector<2x128xf32>
    %196 = tpu.matmul %194, %169, %cst_45 {dimension_numbers = #tpu.dot_dimension_numbers<[1], [0], [0], [1], [0, 0, 1, 1], [], []>} : vector<2x32xf32>, vector<32x128xf32>, vector<2x128xf32> -> vector<2x128xf32>
    %197 = arith.addf %195, %196 : vector<2x128xf32>
    %198 = arith.negf %197 : vector<2x128xf32>
    %199 = math.exp %198 : vector<2x128xf32>
    %cst_46 = arith.constant 1.000000e+00 : f32
    %200 = vector.broadcast %cst_46 : f32 to vector<2x128xf32>
    %201 = arith.addf %200, %199 : vector<2x128xf32>
    %202 = arith.divf %200, %201 : vector<2x128xf32>
    %203 = math.tanh %197 : vector<2x128xf32>
    %204 = vector.extract_strided_slice %202 {offsets = [0, 0], sizes = [2, 32], strides = [1, 1]} : vector<2x128xf32> to vector<2x32xf32>
    %205 = vector.extract_strided_slice %202 {offsets = [0, 32], sizes = [2, 32], strides = [1, 1]} : vector<2x128xf32> to vector<2x32xf32>
    %206 = vector.extract_strided_slice %203 {offsets = [0, 64], sizes = [2, 32], strides = [1, 1]} : vector<2x128xf32> to vector<2x32xf32>
    %207 = vector.extract_strided_slice %202 {offsets = [0, 96], sizes = [2, 32], strides = [1, 1]} : vector<2x128xf32> to vector<2x32xf32>
    %208 = arith.mulf %205, %192 : vector<2x32xf32>
    %209 = arith.mulf %204, %206 : vector<2x32xf32>
    %210 = arith.addf %208, %209 : vector<2x32xf32>
    %211 = math.tanh %210 : vector<2x32xf32>
    %212 = arith.mulf %207, %211 : vector<2x32xf32>
    %213 = vector.extract_strided_slice %174 {offsets = [4, 0], sizes = [2, 128], strides = [1, 1]} : vector<16x128xf32> to vector<2x128xf32>
    %cst_47 = arith.constant dense<0.000000e+00> : vector<2x128xf32>
    %214 = tpu.matmul %212, %169, %cst_47 {dimension_numbers = #tpu.dot_dimension_numbers<[1], [0], [0], [1], [0, 0, 1, 1], [], []>} : vector<2x32xf32>, vector<32x128xf32>, vector<2x128xf32> -> vector<2x128xf32>
    %215 = arith.addf %213, %214 : vector<2x128xf32>
    %216 = arith.negf %215 : vector<2x128xf32>
    %217 = math.exp %216 : vector<2x128xf32>
    %cst_48 = arith.constant 1.000000e+00 : f32
    %218 = vector.broadcast %cst_48 : f32 to vector<2x128xf32>
    %219 = arith.addf %218, %217 : vector<2x128xf32>
    %220 = arith.divf %218, %219 : vector<2x128xf32>
    %221 = math.tanh %215 : vector<2x128xf32>
    %222 = vector.extract_strided_slice %220 {offsets = [0, 0], sizes = [2, 32], strides = [1, 1]} : vector<2x128xf32> to vector<2x32xf32>
    %223 = vector.extract_strided_slice %220 {offsets = [0, 32], sizes = [2, 32], strides = [1, 1]} : vector<2x128xf32> to vector<2x32xf32>
    %224 = vector.extract_strided_slice %221 {offsets = [0, 64], sizes = [2, 32], strides = [1, 1]} : vector<2x128xf32> to vector<2x32xf32>
    %225 = vector.extract_strided_slice %220 {offsets = [0, 96], sizes = [2, 32], strides = [1, 1]} : vector<2x128xf32> to vector<2x32xf32>
    %226 = arith.mulf %223, %210 : vector<2x32xf32>
    %227 = arith.mulf %222, %224 : vector<2x32xf32>
    %228 = arith.addf %226, %227 : vector<2x32xf32>
    %229 = math.tanh %228 : vector<2x32xf32>
    %230 = arith.mulf %225, %229 : vector<2x32xf32>
    %231 = vector.extract_strided_slice %174 {offsets = [6, 0], sizes = [2, 128], strides = [1, 1]} : vector<16x128xf32> to vector<2x128xf32>
    %cst_49 = arith.constant dense<0.000000e+00> : vector<2x128xf32>
    %232 = tpu.matmul %230, %169, %cst_49 {dimension_numbers = #tpu.dot_dimension_numbers<[1], [0], [0], [1], [0, 0, 1, 1], [], []>} : vector<2x32xf32>, vector<32x128xf32>, vector<2x128xf32> -> vector<2x128xf32>
    %233 = arith.addf %231, %232 : vector<2x128xf32>
    %234 = arith.negf %233 : vector<2x128xf32>
    %235 = math.exp %234 : vector<2x128xf32>
    %cst_50 = arith.constant 1.000000e+00 : f32
    %236 = vector.broadcast %cst_50 : f32 to vector<2x128xf32>
    %237 = arith.addf %236, %235 : vector<2x128xf32>
    %238 = arith.divf %236, %237 : vector<2x128xf32>
    %239 = math.tanh %233 : vector<2x128xf32>
    %240 = vector.extract_strided_slice %238 {offsets = [0, 0], sizes = [2, 32], strides = [1, 1]} : vector<2x128xf32> to vector<2x32xf32>
    %241 = vector.extract_strided_slice %238 {offsets = [0, 32], sizes = [2, 32], strides = [1, 1]} : vector<2x128xf32> to vector<2x32xf32>
    %242 = vector.extract_strided_slice %239 {offsets = [0, 64], sizes = [2, 32], strides = [1, 1]} : vector<2x128xf32> to vector<2x32xf32>
    %243 = vector.extract_strided_slice %238 {offsets = [0, 96], sizes = [2, 32], strides = [1, 1]} : vector<2x128xf32> to vector<2x32xf32>
    %244 = arith.mulf %241, %228 : vector<2x32xf32>
    %245 = arith.mulf %240, %242 : vector<2x32xf32>
    %246 = arith.addf %244, %245 : vector<2x32xf32>
    %247 = math.tanh %246 : vector<2x32xf32>
    %248 = arith.mulf %243, %247 : vector<2x32xf32>
    %249 = vector.extract_strided_slice %174 {offsets = [8, 0], sizes = [2, 128], strides = [1, 1]} : vector<16x128xf32> to vector<2x128xf32>
    %cst_51 = arith.constant dense<0.000000e+00> : vector<2x128xf32>
    %250 = tpu.matmul %248, %169, %cst_51 {dimension_numbers = #tpu.dot_dimension_numbers<[1], [0], [0], [1], [0, 0, 1, 1], [], []>} : vector<2x32xf32>, vector<32x128xf32>, vector<2x128xf32> -> vector<2x128xf32>
    %251 = arith.addf %249, %250 : vector<2x128xf32>
    %252 = arith.negf %251 : vector<2x128xf32>
    %253 = math.exp %252 : vector<2x128xf32>
    %cst_52 = arith.constant 1.000000e+00 : f32
    %254 = vector.broadcast %cst_52 : f32 to vector<2x128xf32>
    %255 = arith.addf %254, %253 : vector<2x128xf32>
    %256 = arith.divf %254, %255 : vector<2x128xf32>
    %257 = math.tanh %251 : vector<2x128xf32>
    %258 = vector.extract_strided_slice %256 {offsets = [0, 0], sizes = [2, 32], strides = [1, 1]} : vector<2x128xf32> to vector<2x32xf32>
    %259 = vector.extract_strided_slice %256 {offsets = [0, 32], sizes = [2, 32], strides = [1, 1]} : vector<2x128xf32> to vector<2x32xf32>
    %260 = vector.extract_strided_slice %257 {offsets = [0, 64], sizes = [2, 32], strides = [1, 1]} : vector<2x128xf32> to vector<2x32xf32>
    %261 = vector.extract_strided_slice %256 {offsets = [0, 96], sizes = [2, 32], strides = [1, 1]} : vector<2x128xf32> to vector<2x32xf32>
    %262 = arith.mulf %259, %246 : vector<2x32xf32>
    %263 = arith.mulf %258, %260 : vector<2x32xf32>
    %264 = arith.addf %262, %263 : vector<2x32xf32>
    %265 = math.tanh %264 : vector<2x32xf32>
    %266 = arith.mulf %261, %265 : vector<2x32xf32>
    %267 = vector.extract_strided_slice %174 {offsets = [10, 0], sizes = [2, 128], strides = [1, 1]} : vector<16x128xf32> to vector<2x128xf32>
    %cst_53 = arith.constant dense<0.000000e+00> : vector<2x128xf32>
    %268 = tpu.matmul %266, %169, %cst_53 {dimension_numbers = #tpu.dot_dimension_numbers<[1], [0], [0], [1], [0, 0, 1, 1], [], []>} : vector<2x32xf32>, vector<32x128xf32>, vector<2x128xf32> -> vector<2x128xf32>
    %269 = arith.addf %267, %268 : vector<2x128xf32>
    %270 = arith.negf %269 : vector<2x128xf32>
    %271 = math.exp %270 : vector<2x128xf32>
    %cst_54 = arith.constant 1.000000e+00 : f32
    %272 = vector.broadcast %cst_54 : f32 to vector<2x128xf32>
    %273 = arith.addf %272, %271 : vector<2x128xf32>
    %274 = arith.divf %272, %273 : vector<2x128xf32>
    %275 = math.tanh %269 : vector<2x128xf32>
    %276 = vector.extract_strided_slice %274 {offsets = [0, 0], sizes = [2, 32], strides = [1, 1]} : vector<2x128xf32> to vector<2x32xf32>
    %277 = vector.extract_strided_slice %274 {offsets = [0, 32], sizes = [2, 32], strides = [1, 1]} : vector<2x128xf32> to vector<2x32xf32>
    %278 = vector.extract_strided_slice %275 {offsets = [0, 64], sizes = [2, 32], strides = [1, 1]} : vector<2x128xf32> to vector<2x32xf32>
    %279 = vector.extract_strided_slice %274 {offsets = [0, 96], sizes = [2, 32], strides = [1, 1]} : vector<2x128xf32> to vector<2x32xf32>
    %280 = arith.mulf %277, %264 : vector<2x32xf32>
    %281 = arith.mulf %276, %278 : vector<2x32xf32>
    %282 = arith.addf %280, %281 : vector<2x32xf32>
    %283 = math.tanh %282 : vector<2x32xf32>
    %284 = arith.mulf %279, %283 : vector<2x32xf32>
    %285 = vector.extract_strided_slice %174 {offsets = [12, 0], sizes = [2, 128], strides = [1, 1]} : vector<16x128xf32> to vector<2x128xf32>
    %cst_55 = arith.constant dense<0.000000e+00> : vector<2x128xf32>
    %286 = tpu.matmul %284, %169, %cst_55 {dimension_numbers = #tpu.dot_dimension_numbers<[1], [0], [0], [1], [0, 0, 1, 1], [], []>} : vector<2x32xf32>, vector<32x128xf32>, vector<2x128xf32> -> vector<2x128xf32>
    %287 = arith.addf %285, %286 : vector<2x128xf32>
    %288 = arith.negf %287 : vector<2x128xf32>
    %289 = math.exp %288 : vector<2x128xf32>
    %cst_56 = arith.constant 1.000000e+00 : f32
    %290 = vector.broadcast %cst_56 : f32 to vector<2x128xf32>
    %291 = arith.addf %290, %289 : vector<2x128xf32>
    %292 = arith.divf %290, %291 : vector<2x128xf32>
    %293 = math.tanh %287 : vector<2x128xf32>
    %294 = vector.extract_strided_slice %292 {offsets = [0, 0], sizes = [2, 32], strides = [1, 1]} : vector<2x128xf32> to vector<2x32xf32>
    %295 = vector.extract_strided_slice %292 {offsets = [0, 32], sizes = [2, 32], strides = [1, 1]} : vector<2x128xf32> to vector<2x32xf32>
    %296 = vector.extract_strided_slice %293 {offsets = [0, 64], sizes = [2, 32], strides = [1, 1]} : vector<2x128xf32> to vector<2x32xf32>
    %297 = vector.extract_strided_slice %292 {offsets = [0, 96], sizes = [2, 32], strides = [1, 1]} : vector<2x128xf32> to vector<2x32xf32>
    %298 = arith.mulf %295, %282 : vector<2x32xf32>
    %299 = arith.mulf %294, %296 : vector<2x32xf32>
    %300 = arith.addf %298, %299 : vector<2x32xf32>
    %301 = math.tanh %300 : vector<2x32xf32>
    %302 = arith.mulf %297, %301 : vector<2x32xf32>
    %303 = vector.extract_strided_slice %174 {offsets = [14, 0], sizes = [2, 128], strides = [1, 1]} : vector<16x128xf32> to vector<2x128xf32>
    %cst_57 = arith.constant dense<0.000000e+00> : vector<2x128xf32>
    %304 = tpu.matmul %302, %169, %cst_57 {dimension_numbers = #tpu.dot_dimension_numbers<[1], [0], [0], [1], [0, 0, 1, 1], [], []>} : vector<2x32xf32>, vector<32x128xf32>, vector<2x128xf32> -> vector<2x128xf32>
    %305 = arith.addf %303, %304 : vector<2x128xf32>
    %306 = arith.negf %305 : vector<2x128xf32>
    %307 = math.exp %306 : vector<2x128xf32>
    %cst_58 = arith.constant 1.000000e+00 : f32
    %308 = vector.broadcast %cst_58 : f32 to vector<2x128xf32>
    %309 = arith.addf %308, %307 : vector<2x128xf32>
    %310 = arith.divf %308, %309 : vector<2x128xf32>
    %311 = math.tanh %305 : vector<2x128xf32>
    %312 = vector.extract_strided_slice %310 {offsets = [0, 0], sizes = [2, 32], strides = [1, 1]} : vector<2x128xf32> to vector<2x32xf32>
    %313 = vector.extract_strided_slice %310 {offsets = [0, 32], sizes = [2, 32], strides = [1, 1]} : vector<2x128xf32> to vector<2x32xf32>
    %314 = vector.extract_strided_slice %311 {offsets = [0, 64], sizes = [2, 32], strides = [1, 1]} : vector<2x128xf32> to vector<2x32xf32>
    %315 = vector.extract_strided_slice %310 {offsets = [0, 96], sizes = [2, 32], strides = [1, 1]} : vector<2x128xf32> to vector<2x32xf32>
    %316 = arith.mulf %313, %300 : vector<2x32xf32>
    %317 = arith.mulf %312, %314 : vector<2x32xf32>
    %318 = arith.addf %316, %317 : vector<2x32xf32>
    %319 = math.tanh %318 : vector<2x32xf32>
    %320 = arith.mulf %315, %319 : vector<2x32xf32>
    %c1 = arith.constant 1 : index
    %c0_59 = arith.constant 0 : index
    %c0_60 = arith.constant 0 : index
    %321 = vector.load %arg12[%c1, %c0_59, %c0_60] : memref<2x2x32xf32, #tpu.memory_space<vmem>>, vector<1x2x32xf32>
    %322 = vector.shape_cast %321 : vector<1x2x32xf32> to vector<2x32xf32>
    %323 = vector.shape_cast %320 : vector<2x32xf32> to vector<1x2x32xf32>
    tpu.vector_store %arg12[%c1, %c0_59, %c0_60], %323 {strides = array<i32>} : memref<2x2x32xf32, #tpu.memory_space<vmem>>, vector<1x2x32xf32>,
    %c1_61 = arith.constant 1 : index
    %c0_62 = arith.constant 0 : index
    %c0_63 = arith.constant 0 : index
    %324 = vector.load %arg13[%c1_61, %c0_62, %c0_63] : memref<2x2x32xf32, #tpu.memory_space<vmem>>, vector<1x2x32xf32>
    %325 = vector.shape_cast %324 : vector<1x2x32xf32> to vector<2x32xf32>
    %326 = vector.shape_cast %318 : vector<2x32xf32> to vector<1x2x32xf32>
    tpu.vector_store %arg13[%c1_61, %c0_62, %c0_63], %326 {strides = array<i32>} : memref<2x2x32xf32, #tpu.memory_space<vmem>>, vector<1x2x32xf32>,
    %327 = tpu.concatenate %194, %212, %230, %248, %266, %284, %302, %320 in 0 : vector<2x32xf32>, vector<2x32xf32>, vector<2x32xf32>, vector<2x32xf32>, vector<2x32xf32>, vector<2x32xf32>, vector<2x32xf32>, vector<2x32xf32> -> vector<16x32xf32>
    %328 = arith.truncf %327 : vector<16x32xf32> to vector<16x32xbf16>
    %c0_64 = arith.constant 0 : index
    %c0_65 = arith.constant 0 : index
    %329 = vector.load %arg9[%c0_64, %c0_65] : memref<32x128xbf16, #tpu.memory_space<vmem>>, vector<32x128xbf16>
    %cst_66 = arith.constant dense<0.000000e+00> : vector<16x128xf32>
    %330 = tpu.matmul %328, %329, %cst_66 {dimension_numbers = #tpu.dot_dimension_numbers<[1], [0], [0], [1], [0, 0, 1, 1], [], []>} : vector<16x32xbf16>, vector<32x128xbf16>, vector<16x128xf32> -> vector<16x128xf32>
    %c0_67 = arith.constant 0 : index
    %c0_68 = arith.constant 0 : index
    %331 = vector.load %arg10[%c0_67, %c0_68] : memref<1x128xf32, #tpu.memory_space<vmem>>, vector<1x128xf32>
    %332 = vector.broadcast %331 : vector<1x128xf32> to vector<16x128xf32>
    %333 = arith.addf %330, %332 : vector<16x128xf32>
    %c0_69 = arith.constant 0 : index
    %c0_70 = arith.constant 0 : index
    %334 = vector.load %arg11[%c0_69, %c0_70] : memref<16x128xf32, #tpu.memory_space<vmem>>, vector<16x128xf32>
    tpu.vector_store %arg11[%c0_69, %c0_70], %333 {strides = array<i32>} : memref<16x128xf32, #tpu.memory_space<vmem>>, vector<16x128xf32>,
    return
  }
  func.func @transform_0(%arg0: i32) -> (i32, i32) {
    %c0_i32 = arith.constant 0 : i32
    %c0_i32_0 = arith.constant 0 : i32
    %c0_i32_1 = arith.constant 0 : i32
    return %c0_i32, %c0_i32_0 : i32, i32
  }
  func.func @transform_1(%arg0: i32) -> (i32, i32) {
    %c0_i32 = arith.constant 0 : i32
    %c0_i32_0 = arith.constant 0 : i32
    %c0_i32_1 = arith.constant 0 : i32
    return %c0_i32, %c0_i32_0 : i32, i32
  }
  func.func @transform_2(%arg0: i32) -> (i32, i32) {
    %c0_i32 = arith.constant 0 : i32
    %c0_i32_0 = arith.constant 0 : i32
    %c0_i32_1 = arith.constant 0 : i32
    return %c0_i32, %c0_i32_0 : i32, i32
  }
  func.func @transform_3(%arg0: i32) -> (i32, i32) {
    %c0_i32 = arith.constant 0 : i32
    %c0_i32_0 = arith.constant 0 : i32
    %c0_i32_1 = arith.constant 0 : i32
    return %c0_i32, %c0_i32_0 : i32, i32
  }
  func.func @transform_4(%arg0: i32) -> (i32, i32) {
    %c0_i32 = arith.constant 0 : i32
    %c0_i32_0 = arith.constant 0 : i32
    %c0_i32_1 = arith.constant 0 : i32
    return %c0_i32, %c0_i32_0 : i32, i32
  }
  func.func @transform_5(%arg0: i32) -> (i32, i32) {
    %c0_i32 = arith.constant 0 : i32
    %c0_i32_0 = arith.constant 0 : i32
    %c0_i32_1 = arith.constant 0 : i32
    return %c0_i32, %c0_i32_0 : i32, i32
  }
  func.func @transform_6(%arg0: i32) -> (i32, i32) {
    %c0_i32 = arith.constant 0 : i32
    %c0_i32_0 = arith.constant 0 : i32
    %c0_i32_1 = arith.constant 0 : i32
    return %c0_i32, %c0_i32_0 : i32, i32
  }
  func.func @transform_7(%arg0: i32) -> (i32, i32) {
    %c0_i32 = arith.constant 0 : i32
    %c0_i32_0 = arith.constant 0 : i32
    %c0_i32_1 = arith.constant 0 : i32
    return %c0_i32, %c0_i32_0 : i32, i32
  }
  func.func @transform_8(%arg0: i32) -> (i32, i32) {
    %c0_i32 = arith.constant 0 : i32
    %c0_i32_0 = arith.constant 0 : i32
    %c0_i32_1 = arith.constant 0 : i32
    return %c0_i32, %c0_i32_0 : i32, i32
  }
  func.func @transform_9(%arg0: i32) -> (i32, i32) {
    %c0_i32 = arith.constant 0 : i32
    %c0_i32_0 = arith.constant 0 : i32
    %c0_i32_1 = arith.constant 0 : i32
    return %c0_i32, %c0_i32_0 : i32, i32
  }
  func.func @transform_10(%arg0: i32) -> (i32, i32) {
    %c0_i32 = arith.constant 0 : i32
    %c0_i32_0 = arith.constant 0 : i32
    %c0_i32_1 = arith.constant 0 : i32
    return %c0_i32, %c0_i32_0 : i32, i32
  }
  func.func @transform_11(%arg0: i32) -> (i32, i32, i32) {
    %c0_i32 = arith.constant 0 : i32
    %c0_i32_0 = arith.constant 0 : i32
    %c0_i32_1 = arith.constant 0 : i32
    %c0_i32_2 = arith.constant 0 : i32
    return %c0_i32, %c0_i32_0, %c0_i32_1 : i32, i32, i32
  }
  func.func @transform_12(%arg0: i32) -> (i32, i32, i32) {
    %c0_i32 = arith.constant 0 : i32
    %c0_i32_0 = arith.constant 0 : i32
    %c0_i32_1 = arith.constant 0 : i32
    %c0_i32_2 = arith.constant 0 : i32
    return %c0_i32, %c0_i32_0, %c0_i32_1 : i32, i32, i32
  }
}

</mosaic_0001>

<bundles_post_ra>
// kernel: latent_predictor_forward.1
= control target key start
LH: loop header
LB: loop body
LE: loop exit
PB: predicated region body
PF: predicated region fallthrough
CT: control target
= control target key end

     0   :  { %18 = vsyncpa [#allocation3], 0  ;;  %v2783_v1 = vmov 0   ;;  %v2784_v6 = vmov 0.0   ;;  %s3235_s0 = inlined_call_operand.vmem [shape: s32[16,1], index: 0, kind: input, shape index: {}]   ;;  %s3236_s1 = inlined_call_operand.vmem [shape: f32[16,64], index: 1, kind: input, shape index: {}]   ;;  %s3237_s2 = inlined_call_operand.vmem [shape: bf16[64,128], index: 2, kind: input, shape index: {}]   ;;  %s3238_s3 = inlined_call_operand.vmem [shape: f32[32,128], index: 3, kind: input, shape index: {}]   ;;  %s3239_s4 = inlined_call_operand.vmem [shape: f32[1,128], index: 4, kind: input, shape index: {}]   ;;  %s3240_s5 = inlined_call_operand.vmem [shape: bf16[32,128], index: 5, kind: input, shape index: {}]   ;;  %s3241_s6 = inlined_call_operand.vmem [shape: f32[32,128], index: 6, kind: input, shape index: {}]   ;;  %s3242_s7 = inlined_call_operand.vmem [shape: f32[1,128], index: 7, kind: input, shape index: {}]   ;;  %s3243_s8 = inlined_call_operand.vmem [shape: bf16[32,128], index: 8, kind: input, shape index: {}]   ;;  %s3244_s9 = inlined_call_operand.vmem [shape: f32[1,128], index: 9, kind: input, shape index: {}]   ;;  %s3245_s10 = inlined_call_operand.vmem [shape: f32[16,128], index: 10, kind: output, shape index: {0}]   ;;  %s3246_s11 = inlined_call_operand.hbm [shape: f32[2,2,32], index: 11, kind: output, shape index: {1}]   ;;  %s3247_s12 = inlined_call_operand.hbm [shape: f32[2,2,32], index: 12, kind: output, shape index: {2}]  }
   0x1   :  { %v41_v0 = vld [vmem:[%s3235_s0] sm:$0xff]  ;;  %2598 = vset.pattern.permute.xlu0 %v2783_v1  ;;  %v58_v3 = vld [vmem:[%s3236_s1 + $0x8] sm:$0xff] }
   0x2   :  { %v57_v2 = vld [vmem:[%s3236_s1] sm:$0xff]  ;;  %46 = vperm.xlu0 %2598, %v41_v0   ;;  %v42_v5 = vld [vmem:[%s3235_s0 + $0x8] sm:$0xff] }
   0x3   :  { %v2488_v4 = vpack.c.bf16 %v58_v3, %v57_v2 }
   0x5   :  { %2489 = vmatprep.subr.bf16.mxu1 %v2488_v4 }
   0x6   :  { %2491 = vmatpush3.bf16.msra.mxu1 %v2488_v4  ;;  %49 = vperm.xlu0 %2598, %v42_v5  }
   0x7   :  { %2284 = vmatprep.subr.bf16.mxu1 %v2784_v6 }
   0x8   :  { %19 = vsyncpa [#allocation5], 0  ;;  %v149_v7 = vld [vmem:[%s3238_s3] sm:$0xff]  ;;  %v150_v8 = vld [vmem:[%s3238_s3 + $0x8] sm:$0xff]  ;;  %v2785_v9 = vmov 0.0|0.0   ;;  %v43_v11 = vlaneseq  ;;  %vm59_vm0 = vcmask 130048  }
   0x9   :  { %2492 = vmatprep.subr.bf16.mxu0 %v2785_v9  ;;  %v2878_v10 = vpack.c.bf16 %v150_v8, %v149_v7  ;;  %v2599_v16 = vld [vmem:[%s3237_s2] sm:$0xff]   ;;  %v2600_v18 = vld [vmem:[%s3237_s2 + $0x8] sm:$0xff]   ;;  %v2601_v19 = vld [vmem:[%s3237_s2 + $0x10] sm:$0xff]   ;;  %vm2786_vm3 = vmmov 0   ;;  %vm185_vm4 = vcmask 523264   ;;  %s2787_s25 = smov 64  }
   0xa   :  { %v44_v12 = vand.u32 127, %v43_v11  ;;  %v2602_v20 = vld [vmem:[%s3237_s2 + $0x18] sm:$0xff]   ;;  %v151_v21 = vld [vmem:[%s3238_s3 + $0x10] sm:$0xff]  ;;  %2304 = vmatprep.mubr.msk.f32.mxu0 %vm2786_vm3, %v2784_v6  ;;  %v2138_v29 = vld [vmem:[%s3239_s4] ss:$0 sm:$0xff]  ;;  %s2788_s4 = smov 32  }
   0xb   :  { %2494 = vmatpush3.bf16.msra.mxu0 %v2878_v10  ;;  %v152_v22 = vld [vmem:[%s3238_s3 + $0x18] sm:$0xff]  ;;  %vm230_vm5 = vcmask 261120   ;;  %vm1084_vm6 = vcmask 1041408   ;;  %vm1086_vm7 = vcmask 1043456   ;;  %vm1088_vm8 = vcmask 1045504   ;;  %s2789_s21 = smov 96  }
   0xc   :  { %2495 = vmatprep.subr.bf16.mxu0 %v2785_v9  ;;  %v2905_v23 = vpack.c.bf16 %v152_v22, %v151_v21  ;;  %vm1077_vm9 = vcmask 261126   ;;  %s2791_s23 = smov [#allocation4]  }
   0xd   :  { %s2117_s24 = sshll.u32 %s2791_s23, 4  ;;  %s2118_s24 = int_to_ptr.vmem [resolvable:$true] %s2117_s24 }
   0xf   :  { %2497 = vmatpush3.bf16.msra.mxu0 %v2905_v23 }
  0x10   :  { %2498 = vmatprep.subr.bf16.mxu0 %v2785_v9 }
  0x12   :  { %2305 = vmatmul.mubr.f32.vlgmr.msra.gmra.mrb[0].mxu0 %v2784_v6 }
  0x13   :  { %2500 = vmatpush3.bf16.msra.mxu0 %v2878_v10  ;;  %2315 = vmatprep.mubr.msk.f32.mxu0 %vm2786_vm3, %v2784_v6 }
  0x14   :  { %2501 = vmatprep.subr.bf16.mxu0 %v2785_v9 }
  0x17   :  { %2503 = vmatpush3.bf16.msra.mxu0 %v2905_v23 }
  0x18   :  { %2510 = vmatprep.subr.bf16.mxu0 %v2785_v9 }
  0x81   :  { %v47_v13 = vpop.permute.xlu0 %46 }
  0x82   :  { %vm51_vm1 = vcmp.eq.s32.totalorder %v47_v13, %v44_v12 }
  0x83   :  { %v2134_v14 = vsel %vm51_vm1, 1.0, %v2784_v6 }
  0x84   :  { %2281 = vmatprep.mubr.msk.f32.mxu1 %vm59_vm0, %v2134_v14 }
  0x85   :  { %v50_v15 = vpop.permute.xlu0 %49 }
  0x86   :  { %vm52_vm2 = vcmp.eq.s32.totalorder %v50_v15, %v44_v12 }
  0x87   :  { %v2135_v17 = vsel %vm52_vm2, 1.0, %v2784_v6 }
  0x88   :  { %2282 = vmatmul.mubr.msk.f32.vlgmr.msra.gmra.mrb[0].mxu1 %vm59_vm0, %v2135_v17 }
  0x89   :  { %2285 = vmatpush3.bf16.msra.mxu1 %v2599_v16  ;;  %2292 = vmatprep.mubr.msk.bf16.mxu1 %vm2786_vm3, %v2784_v6 }
  0x8a   :  { %2286 = vmatprep.subr.bf16.mxu1 %v2784_v6 }
  0x8d   :  { %2287 = vmatpush3.bf16.msra.mxu1 %v2600_v18 }
  0x8e   :  { %2288 = vmatprep.subr.bf16.mxu1 %v2784_v6 }
  0x91   :  { %2289 = vmatpush3.bf16.msra.mxu1 %v2601_v19 }
  0x92   :  { %2290 = vmatprep.subr.bf16.mxu1 %v2784_v6 }
  0x95   :  { %2291 = vmatpush3.bf16.msra.mxu1 %v2602_v20 }
  0x96   :  { %2504 = vmatprep.subr.bf16.mxu1 %v2785_v9 }
  0xe5   :  { %v300_v27 = vpop.f32.mrb[0].mxu0 }
  0xe6   :  { %v2306_v28 = vpop.f32.mrb[1].mxu0 }
 0x15b   :  { %v2283_v24 = vpop.f32.mrb[0].mxu1 }
 0x15c   :  { %v132_v25 = vpop.f32.mrb[1].mxu1 }
 0x15d   :  { %v154_v26 = vpack.c.bf16 %v2283_v24, %v132_v25 }
 0x15f   :  { %2293 = vmatmul.mubr.msk.bf16.vlgmr.msra.gmra.mrb[4].mxu1 %vm185_vm4, %v154_v26 }
 0x160   :  { %2506 = vmatpush3.bf16.msra.mxu1 %v2878_v10  ;;  %2326 = vmatprep.mubr.msk.f32.mxu1 %vm2786_vm3, %v2784_v6 }
 0x161   :  { %2507 = vmatprep.subr.bf16.mxu1 %v2785_v9 }
 0x164   :  { %2509 = vmatpush3.bf16.msra.mxu1 %v2905_v23 }
 0x165   :  { %2516 = vmatprep.subr.bf16.mxu1 %v2785_v9 }
 0x232   :  { %v223_v30 = vpop.f32.mrb[4].mxu1 }
 0x233   :  { %v2930_v31 = vadd.f32 %v2138_v29, %v223_v30  ;;  %v2294_v32 = vpop.f32.mrb[5].mxu1 }
 0x234   :  { %v226_v33 = vpop.f32.mrb[6].mxu1 }
 0x235   :  { %v304_v34 = vadd.f32 %v300_v27, %v2930_v31  ;;  %v2933_v35 = vadd.f32 %v2138_v29, %v226_v33  ;;  %v2295_v36 = vpop.f32.mrb[7].mxu1 }
 0x237   :  { %2607 = vtanh.f32 %v304_v34  ;;  %v2144_v38 = vmul.f32 -1.442695, %v304_v34 }
 0x239   :  { %2609 = vpow2.f32 %v2144_v38 }
 0x241   :  { %v2608_v37 = vpop.eup %2607 }
 0x242   :  { %314 = vrot.lane.b32.xlu1 %v2608_v37, %s2787_s25 }
 0x243   :  { %v2610_v39 = vpop.eup %2609 }
 0x244   :  { %v308_v40 = vadd.f32 1.0, %v2610_v39 }
 0x246   :  { %2611 = vrcp.f32 %v308_v40 }
 0x250   :  { %v2612_v41 = vpop.eup %2611 }
 0x251   :  { %v312_v44 = vmul.f32 0.0, %v2612_v41 }
 0x2b4   :  { %v315_v42 = vpop.permute.xlu1 %314 }
 0x2b5   :  { %v317_v43 = vmul.f32 %v2612_v41, %v315_v42 }
 0x2b7   :  { %319 = vrot.lane.b32.xlu1 %v317_v43, %s2788_s4 }
 0x329   :  { %v320_v45 = vpop.permute.xlu1 %319 }
 0x32a   :  { %v322_v46 = vadd.f32 %v320_v45, %v312_v44 }
 0x32c   :  { %2613 = vtanh.f32 %v322_v46  ;;  %v416_v62 = vrot.slane %v322_v46, 6 }
 0x336   :  { %v2614_v47 = vpop.eup %2613 }
 0x337   :  { %325 = vrot.lane.b32.xlu0 %v2614_v47, %s2787_s25 }
 0x3a9   :  { %v326_v48 = vpop.permute.xlu0 %325 }
 0x3aa   :  { %v2938_v49 = vmul.f32 %v2612_v41, %v326_v48 }
 0x3ac   :  { %330 = vrot.lane.b32.xlu1 %v2938_v49, %s2788_s4 }
 0x41e   :  { %v331_v50 = vpop.permute.xlu1 %330 }
 0x41f   :  { %2316 = vmatmul.mubr.msk.f32.vlgmr.msra.gmra.mrb[2].mxu0 %vm230_vm5, %v331_v50 }
 0x420   :  { %2512 = vmatpush3.bf16.msra.mxu0 %v2878_v10  ;;  %2337 = vmatprep.mubr.msk.f32.mxu0 %vm2786_vm3, %v2784_v6 }
 0x421   :  { %2513 = vmatprep.subr.bf16.mxu0 %v2785_v9 }
 0x424   :  { %2515 = vmatpush3.bf16.msra.mxu0 %v2905_v23 }
 0x425   :  { %2522 = vmatprep.subr.bf16.mxu0 %v2785_v9 }
 0x4f2   :  { %v400_v51 = vpop.f32.mrb[2].mxu0 }
 0x4f3   :  { %v405_v52 = vrot.slane %v400_v51, 6  ;;  %v2317_v53 = vpop.f32.mrb[3].mxu0 }
 0x4f5   :  { %v407_v54 = vadd.f32 %v405_v52, %v2930_v31 }
 0x4f7   :  { %2615 = vtanh.f32 %v407_v54  ;;  %v2146_v56 = vmul.f32 -1.442695, %v407_v54 }
 0x4f9   :  { %2617 = vpow2.f32 %v2146_v56 }
 0x501   :  { %v2616_v55 = vpop.eup %2615 }
 0x502   :  { %420 = vrot.lane.b32.xlu0 %v2616_v55, %s2787_s25 }
 0x503   :  { %v2618_v57 = vpop.eup %2617 }
 0x504   :  { %v411_v58 = vadd.f32 1.0, %v2618_v57 }
 0x506   :  { %2619 = vrcp.f32 %v411_v58 }
 0x510   :  { %v2620_v59 = vpop.eup %2619 }
 0x511   :  { %v418_v63 = vmul.f32 %v2620_v59, %v416_v62 }
 0x574   :  { %v421_v60 = vpop.permute.xlu0 %420 }
 0x575   :  { %v423_v61 = vmul.f32 %v2620_v59, %v421_v60 }
 0x577   :  { %425 = vrot.lane.b32.xlu1 %v423_v61, %s2788_s4 }
 0x5e9   :  { %v426_v0 = vpop.permute.xlu1 %425 }
 0x5ea   :  { %v428_v1 = vadd.f32 %v426_v0, %v418_v63 }
 0x5ec   :  { %2621 = vtanh.f32 %v428_v1  ;;  %v523_v21 = vrot.slane %v428_v1, 6 }
 0x5f6   :  { %v2622_v2 = vpop.eup %2621 }
 0x5f7   :  { %431 = vrot.lane.b32.xlu0 %v2622_v2, %s2787_s25 }
 0x669   :  { %v432_v3 = vpop.permute.xlu0 %431 }
 0x66a   :  { %v434_v4 = vmul.f32 %v2620_v59, %v432_v3 }
 0x66c   :  { %v436_v5 = vrot.slane %v434_v4, 2  ;;  %v1085_v29 = vsel %vm1084_vm6, %v2938_v49, %v434_v4 }
 0x66e   :  { %437 = vrot.lane.b32.xlu1 %v436_v5, %s2788_s4 }
 0x6e0   :  { %v438_v7 = vpop.permute.xlu1 %437 }
 0x6e1   :  { %2327 = vmatmul.mubr.msk.f32.vlgmr.msra.gmra.mrb[2].mxu1 %vm230_vm5, %v438_v7 }
 0x6e2   :  { %2518 = vmatpush3.bf16.msra.mxu1 %v2878_v10  ;;  %2348 = vmatprep.mubr.msk.f32.mxu1 %vm2786_vm3, %v2784_v6 }
 0x6e3   :  { %2519 = vmatprep.subr.bf16.mxu1 %v2785_v9 }
 0x6e6   :  { %2521 = vmatpush3.bf16.msra.mxu1 %v2905_v23 }
 0x6e7   :  { %2528 = vmatprep.subr.bf16.mxu1 %v2785_v9 }
 0x7b4   :  { %v507_v8 = vpop.f32.mrb[2].mxu1 }
 0x7b5   :  { %v512_v11 = vrot.slane %v507_v8, 4  ;;  %v2328_v12 = vpop.f32.mrb[3].mxu1 }
 0x7b7   :  { %v514_v13 = vadd.f32 %v512_v11, %v2930_v31 }
 0x7b9   :  { %2623 = vtanh.f32 %v514_v13  ;;  %v2148_v15 = vmul.f32 -1.442695, %v514_v13 }
 0x7bb   :  { %2625 = vpow2.f32 %v2148_v15 }
 0x7c3   :  { %v2624_v14 = vpop.eup %2623 }
 0x7c4   :  { %527 = vrot.lane.b32.xlu0 %v2624_v14, %s2787_s25 }
 0x7c5   :  { %v2626_v16 = vpop.eup %2625 }
 0x7c6   :  { %v518_v17 = vadd.f32 1.0, %v2626_v16 }
 0x7c8   :  { %2627 = vrcp.f32 %v518_v17 }
 0x7d2   :  { %v2628_v18 = vpop.eup %2627 }
 0x7d3   :  { %v525_v22 = vmul.f32 %v2628_v18, %v523_v21 }
 0x836   :  { %v528_v19 = vpop.permute.xlu0 %527 }
 0x837   :  { %v530_v20 = vmul.f32 %v2628_v18, %v528_v19 }
 0x839   :  { %532 = vrot.lane.b32.xlu1 %v530_v20, %s2788_s4 }
 0x8ab   :  { %v533_v24 = vpop.permute.xlu1 %532 }
 0x8ac   :  { %v535_v25 = vadd.f32 %v533_v24, %v525_v22 }
 0x8ae   :  { %2629 = vtanh.f32 %v535_v25  ;;  %v630_v46 = vrot.slane %v535_v25, 6 }
 0x8b8   :  { %v2630_v26 = vpop.eup %2629 }
 0x8b9   :  { %538 = vrot.lane.b32.xlu0 %v2630_v26, %s2787_s25 }
 0x92b   :  { %v539_v27 = vpop.permute.xlu0 %538 }
 0x92c   :  { %v541_v28 = vmul.f32 %v2628_v18, %v539_v27 }
 0x92e   :  { %v543_v30 = vrot.slane %v541_v28, 4  ;;  %v1087_v32 = vsel %vm1086_vm7, %v1085_v29, %v541_v28 }
 0x930   :  { %544 = vrot.lane.b32.xlu1 %v543_v30, %s2788_s4 }
 0x9a2   :  { %v545_v33 = vpop.permute.xlu1 %544 }
 0x9a3   :  { %2338 = vmatmul.mubr.msk.f32.vlgmr.msra.gmra.mrb[4].mxu0 %vm230_vm5, %v545_v33 }
 0x9a4   :  { %2524 = vmatpush3.bf16.msra.mxu0 %v2878_v10  ;;  %2359 = vmatprep.mubr.msk.f32.mxu0 %vm2786_vm3, %v2784_v6 }
 0x9a5   :  { %2525 = vmatprep.subr.bf16.mxu0 %v2785_v9 }
 0x9a8   :  { %2527 = vmatpush3.bf16.msra.mxu0 %v2905_v23 }
 0x9a9   :  { %2534 = vmatprep.subr.bf16.mxu0 %v2785_v9 }
 0xa76   :  { %v614_v34 = vpop.f32.mrb[4].mxu0 }
 0xa77   :  { %v619_v36 = vrot.slane %v614_v34, 2  ;;  %v2339_v37 = vpop.f32.mrb[5].mxu0 }
 0xa79   :  { %v621_v38 = vadd.f32 %v619_v36, %v2930_v31 }
 0xa7b   :  { %2631 = vtanh.f32 %v621_v38  ;;  %v2150_v40 = vmul.f32 -1.442695, %v621_v38 }
 0xa7d   :  { %2633 = vpow2.f32 %v2150_v40 }
 0xa85   :  { %v2632_v39 = vpop.eup %2631 }
 0xa86   :  { %634 = vrot.lane.b32.xlu0 %v2632_v39, %s2787_s25 }
 0xa87   :  { %v2634_v41 = vpop.eup %2633 }
 0xa88   :  { %v625_v42 = vadd.f32 1.0, %v2634_v41 }
 0xa8a   :  { %2635 = vrcp.f32 %v625_v42 }
 0xa94   :  { %v2636_v43 = vpop.eup %2635 }
 0xa95   :  { %v632_v47 = vmul.f32 %v2636_v43, %v630_v46 }
 0xaf8   :  { %v635_v44 = vpop.permute.xlu0 %634 }
 0xaf9   :  { %v637_v45 = vmul.f32 %v2636_v43, %v635_v44 }
 0xafb   :  { %639 = vrot.lane.b32.xlu1 %v637_v45, %s2788_s4 }
 0xb6d   :  { %v640_v48 = vpop.permute.xlu1 %639 }
 0xb6e   :  { %v642_v49 = vadd.f32 %v640_v48, %v632_v47 }
 0xb70   :  { %2637 = vtanh.f32 %v642_v49  ;;  %v734_v1 = vrot.slane %v642_v49, 6 }
 0xb7a   :  { %v2638_v31 = vpop.eup %2637 }
 0xb7b   :  { %645 = vrot.lane.b32.xlu0 %v2638_v31, %s2787_s25 }
 0xbed   :  { %v646_v50 = vpop.permute.xlu0 %645 }
 0xbee   :  { %v648_v51 = vmul.f32 %v2636_v43, %v646_v50 }
 0xbf0   :  { %v650_v52 = vrot.slane %v648_v51, 6  ;;  %v2981_v53 = vsel %vm1088_vm8, %v1087_v32, %v648_v51 }
 0xbf2   :  { %651 = vrot.lane.b32.xlu1 %v650_v52, %s2788_s4 }
 0xc64   :  { %v652_v54 = vpop.permute.xlu1 %651 }
 0xc65   :  { %2349 = vmatmul.mubr.msk.f32.vlgmr.msra.gmra.mrb[8].mxu1 %vm230_vm5, %v652_v54 }
 0xc66   :  { %2530 = vmatpush3.bf16.msra.mxu1 %v2878_v10  ;;  %2370 = vmatprep.mubr.msk.f32.mxu1 %vm2786_vm3, %v2784_v6 }
 0xc67   :  { %2531 = vmatprep.subr.bf16.mxu1 %v2785_v9 }
 0xc6a   :  { %2533 = vmatpush3.bf16.msra.mxu1 %v2905_v23 }
 0xc6b   :  { %2384 = vmatprep.subr.bf16.mxu1 %v2784_v6 }
 0xd38   :  { %v721_v55 = vpop.f32.mrb[8].mxu1 }
 0xd39   :  { %v725_v56 = vadd.f32 %v721_v55, %v2933_v35  ;;  %v2350_v57 = vpop.f32.mrb[9].mxu1 }
 0xd3b   :  { %2639 = vtanh.f32 %v725_v56  ;;  %v2152_v59 = vmul.f32 -1.442695, %v725_v56 }
 0xd3d   :  { %2641 = vpow2.f32 %v2152_v59 }
 0xd45   :  { %v2640_v58 = vpop.eup %2639 }
 0xd46   :  { %738 = vrot.lane.b32.xlu0 %v2640_v58, %s2787_s25 }
 0xd47   :  { %v2642_v60 = vpop.eup %2641 }
 0xd48   :  { %v729_v61 = vadd.f32 1.0, %v2642_v60 }
 0xd4a   :  { %2643 = vrcp.f32 %v729_v61 }
 0xd54   :  { %v2644_v62 = vpop.eup %2643 }
 0xd55   :  { %v736_v2 = vmul.f32 %v2644_v62, %v734_v1 }
 0xdb8   :  { %v739_v63 = vpop.permute.xlu0 %738 }
 0xdb9   :  { %v741_v0 = vmul.f32 %v2644_v62, %v739_v63 }
 0xdbb   :  { %743 = vrot.lane.b32.xlu1 %v741_v0, %s2788_s4 }
 0xe2d   :  { %v744_v3 = vpop.permute.xlu1 %743 }
 0xe2e   :  { %v746_v4 = vadd.f32 %v744_v3, %v736_v2 }
 0xe30   :  { %2645 = vtanh.f32 %v746_v4 }
 0xe3a   :  { %v2646_v5 = vpop.eup %2645 }
 0xe3b   :  { %749 = vrot.lane.b32.xlu0 %v2646_v5, %s2787_s25 }
 0xead   :  { %v750_v7 = vpop.permute.xlu0 %749 }
 0xeae   :  { %v2995_v8 = vmul.f32 %v2644_v62, %v750_v7  ;;  %v1097_v7 = vld [vmem:[%s3241_s6] sm:$0xff] }
 0xeb0   :  { %754 = vrot.lane.b32.xlu1 %v2995_v8, %s2788_s4 }
 0xf22   :  { %v755_v11 = vpop.permute.xlu1 %754 }
 0xf23   :  { %2360 = vmatmul.mubr.msk.f32.vlgmr.msra.gmra.mrb[6].mxu0 %vm230_vm5, %v755_v11 }
 0xf24   :  { %2536 = vmatpush3.bf16.msra.mxu0 %v2878_v10  ;;  %2381 = vmatprep.mubr.msk.f32.mxu0 %vm2786_vm3, %v2784_v6 }
 0xf25   :  { %2537 = vmatprep.subr.bf16.mxu0 %v2785_v9 }
 0xf28   :  { %2539 = vmatpush3.bf16.msra.mxu0 %v2905_v23  ;;  %v840_v23 = vrot.slane %v746_v4, 6 }
 0xf29   :  { %2540 = vmatprep.subr.bf16.mxu0 %v2785_v9 }
 0xff6   :  { %v824_v12 = vpop.f32.mrb[6].mxu0 }
 0xff7   :  { %v829_v13 = vrot.slane %v824_v12, 6  ;;  %v2361_v14 = vpop.f32.mrb[7].mxu0  ;;  %v1099_v12 = vld [vmem:[%s3241_s6 + $0x10] sm:$0xff] }
 0xff8   :  { %v2604_v14 = vld [vmem:[%s3240_s5 + $0x8] sm:$0xff]  }
 0xff9   :  { %v831_v15 = vadd.f32 %v829_v13, %v2933_v35  ;;  %v1100_v13 = vld [vmem:[%s3241_s6 + $0x18] sm:$0xff] }
 0xffb   :  { %2647 = vtanh.f32 %v831_v15  ;;  %v2154_v17 = vmul.f32 -1.442695, %v831_v15  ;;  %v3053_v15 = vpack.c.bf16 %v1100_v13, %v1099_v12 }
 0xffd   :  { %2649 = vpow2.f32 %v2154_v17 }
0x1005   :  { %v2648_v16 = vpop.eup %2647 }
0x1006   :  { %844 = vrot.lane.b32.xlu0 %v2648_v16, %s2787_s25 }
0x1007   :  { %v2650_v10 = vpop.eup %2649 }
0x1008   :  { %v835_v18 = vadd.f32 1.0, %v2650_v10 }
0x100a   :  { %2651 = vrcp.f32 %v835_v18 }
0x1014   :  { %v2652_v19 = vpop.eup %2651 }
0x1015   :  { %v842_v22 = vmul.f32 %v2652_v19, %v840_v23 }
0x1078   :  { %v845_v20 = vpop.permute.xlu0 %844 }
0x1079   :  { %v847_v21 = vmul.f32 %v2652_v19, %v845_v20 }
0x107b   :  { %849 = vrot.lane.b32.xlu1 %v847_v21, %s2788_s4 }
0x10ed   :  { %v850_v24 = vpop.permute.xlu1 %849 }
0x10ee   :  { %v852_v25 = vadd.f32 %v850_v24, %v842_v22 }
0x10f0   :  { %2653 = vtanh.f32 %v852_v25  ;;  %v947_v44 = vrot.slane %v852_v25, 6 }
0x10fa   :  { %v2654_v26 = vpop.eup %2653 }
0x10fb   :  { %855 = vrot.lane.b32.xlu0 %v2654_v26, %s2787_s25 }
0x116d   :  { %v856_v27 = vpop.permute.xlu0 %855 }
0x116e   :  { %v858_v28 = vmul.f32 %v2652_v19, %v856_v27 }
0x1170   :  { %v860_v29 = vrot.slane %v858_v28, 2  ;;  %v1090_v50 = vsel %vm1084_vm6, %v2995_v8, %v858_v28  ;;  %v1098_v8 = vld [vmem:[%s3241_s6 + $0x8] sm:$0xff] }
0x1171   :  { %v3040_v11 = vpack.c.bf16 %v1098_v8, %v1097_v7 }
0x1172   :  { %861 = vrot.lane.b32.xlu1 %v860_v29, %s2788_s4 }
0x11e4   :  { %v862_v30 = vpop.permute.xlu1 %861 }
0x11e5   :  { %2371 = vmatmul.mubr.msk.f32.vlgmr.msra.gmra.mrb[10].mxu1 %vm230_vm5, %v862_v30 }
0x11e6   :  { %2388 = vmatprep.mubr.msk.bf16.mxu1 %vm2786_vm3, %v2784_v6 }
0x12b8   :  { %v931_v32 = vpop.f32.mrb[10].mxu1 }
0x12b9   :  { %v936_v33 = vrot.slane %v931_v32, 4  ;;  %v2372_v34 = vpop.f32.mrb[11].mxu1 }
0x12bb   :  { %v938_v36 = vadd.f32 %v936_v33, %v2933_v35 }
0x12bd   :  { %2655 = vtanh.f32 %v938_v36  ;;  %v2156_v38 = vmul.f32 -1.442695, %v938_v36 }
0x12bf   :  { %2657 = vpow2.f32 %v2156_v38 }
0x12c7   :  { %v2656_v37 = vpop.eup %2655 }
0x12c8   :  { %951 = vrot.lane.b32.xlu0 %v2656_v37, %s2787_s25 }
0x12c9   :  { %v2658_v39 = vpop.eup %2657 }
0x12ca   :  { %v942_v40 = vadd.f32 1.0, %v2658_v39 }
0x12cc   :  { %2659 = vrcp.f32 %v942_v40 }
0x12d6   :  { %v2660_v41 = vpop.eup %2659 }
0x12d7   :  { %v949_v45 = vmul.f32 %v2660_v41, %v947_v44 }
0x133a   :  { %v952_v42 = vpop.permute.xlu0 %951 }
0x133b   :  { %v954_v43 = vmul.f32 %v2660_v41, %v952_v42 }
0x133d   :  { %956 = vrot.lane.b32.xlu1 %v954_v43, %s2788_s4 }
0x13af   :  { %v957_v46 = vpop.permute.xlu1 %956 }
0x13b0   :  { %v959_v47 = vadd.f32 %v957_v46, %v949_v45 }
0x13b2   :  { %2661 = vtanh.f32 %v959_v47  ;;  %v1054_v2 = vrot.slane %v959_v47, 6 }
0x13bc   :  { %v2662_v48 = vpop.eup %2661 }
0x13bd   :  { %962 = vrot.lane.b32.xlu0 %v2662_v48, %s2787_s25 }
0x142f   :  { %v963_v49 = vpop.permute.xlu0 %962 }
0x1430   :  { %v965_v31 = vmul.f32 %v2660_v41, %v963_v49 }
0x1432   :  { %v967_v51 = vrot.slane %v965_v31, 4  ;;  %v1091_v52 = vsel %vm1086_vm7, %v1090_v50, %v965_v31 }
0x1434   :  { %968 = vrot.lane.b32.xlu1 %v967_v51, %s2788_s4 }
0x14a6   :  { %v969_v54 = vpop.permute.xlu1 %968 }
0x14a7   :  { %2382 = vmatmul.mubr.msk.f32.vlgmr.msra.gmra.mrb[8].mxu0 %vm230_vm5, %v969_v54 }
0x14a8   :  { %2400 = vmatprep.mubr.msk.f32.mxu0 %vm2786_vm3, %v2784_v6  ;;  %2542 = vmatpush3.bf16.msra.mxu0 %v3040_v11 }
0x14a9   :  { %2543 = vmatprep.subr.bf16.mxu0 %v2785_v9 }
0x14ac   :  { %2545 = vmatpush3.bf16.msra.mxu0 %v3053_v15 }
0x14ad   :  { %2552 = vmatprep.subr.bf16.mxu0 %v2785_v9 }
0x14af   :  { %2401 = vmatmul.mubr.f32.vlgmr.msra.gmra.mrb[10].mxu0 %v2784_v6 }
0x14b0   :  { %2554 = vmatpush3.bf16.msra.mxu0 %v3040_v11  ;;  %2422 = vmatprep.mubr.msk.f32.mxu0 %vm2786_vm3, %v2784_v6 }
0x14b1   :  { %2555 = vmatprep.subr.bf16.mxu0 %v2785_v9 }
0x14b4   :  { %2557 = vmatpush3.bf16.msra.mxu0 %v3053_v15 }
0x14b5   :  { %2564 = vmatprep.subr.bf16.mxu0 %v2785_v9 }
0x157a   :  { %v1038_v55 = vpop.f32.mrb[8].mxu0 }
0x157b   :  { %v1043_v56 = vrot.slane %v1038_v55, 2  ;;  %v2383_v57 = vpop.f32.mrb[9].mxu0 }
0x157d   :  { %v1045_v58 = vadd.f32 %v1043_v56, %v2933_v35  ;;  %v2603_v35 = vld [vmem:[%s3240_s5] sm:$0xff]  }
0x157e   :  { %2385 = vmatpush3.bf16.msra.mxu1 %v2603_v35 }
0x157f   :  { %2663 = vtanh.f32 %v1045_v58  ;;  %v2158_v60 = vmul.f32 -1.442695, %v1045_v58  ;;  %2386 = vmatprep.subr.bf16.mxu1 %v2784_v6 }
0x1581   :  { %2665 = vpow2.f32 %v2158_v60 }
0x1582   :  { %2387 = vmatpush3.bf16.msra.mxu1 %v2604_v14  ;;  %v1234_v21 = vpop.f32.mrb[10].mxu0 }
0x1583   :  { %2546 = vmatprep.subr.bf16.mxu1 %v2785_v9  ;;  %v2402_v23 = vpop.f32.mrb[11].mxu0 }
0x1589   :  { %v2664_v59 = vpop.eup %2663 }
0x158a   :  { %1058 = vrot.lane.b32.xlu0 %v2664_v59, %s2787_s25 }
0x158b   :  { %v2666_v61 = vpop.eup %2665 }
0x158c   :  { %v1049_v62 = vadd.f32 1.0, %v2666_v61 }
0x158e   :  { %2667 = vrcp.f32 %v1049_v62 }
0x1598   :  { %v2668_v63 = vpop.eup %2667 }
0x1599   :  { %v1056_v3 = vmul.f32 %v2668_v63, %v1054_v2 }
0x15fc   :  { %v1059_v0 = vpop.permute.xlu0 %1058 }
0x15fd   :  { %v1061_v1 = vmul.f32 %v2668_v63, %v1059_v0 }
0x15ff   :  { %1063 = vrot.lane.b32.xlu1 %v1061_v1, %s2788_s4 }
0x1671   :  { %v1064_v4 = vpop.permute.xlu1 %1063 }
0x1672   :  { %v3028_v5 = vadd.f32 %v1064_v4, %v1056_v3 }
0x1674   :  { %2669 = vtanh.f32 %v3028_v5 }
0x167e   :  { %v2670_v16 = vpop.eup %2669 }
0x167f   :  { %1069 = vrot.lane.b32.xlu0 %v2670_v16, %s2787_s25 }
0x16f1   :  { %v1070_v17 = vpop.permute.xlu0 %1069 }
0x16f2   :  { %v3067_v10 = vmul.f32 %v2668_v63, %v1070_v17 }
0x16f4   :  { %v1092_v18 = vsel %vm1088_vm8, %v1091_v52, %v3067_v10 }
0x16f5   :  { %v1102_v19 = vpack.c.bf16 %v1092_v18, %v2981_v53  ;;  %v2159_v53 = vld [vmem:[%s3242_s7] ss:$0 sm:$0xff] }
0x16f7   :  { %1110 = vrot.lane.b32.xlu1 %v1102_v19, %s2788_s4 }
0x1769   :  { %v1111_v20 = vpop.permute.xlu1 %1110 }
0x176a   :  { %2389 = vmatmul.mubr.msk.bf16.vlgmr.msra.gmra.mrb[12].mxu1 %vm230_vm5, %v1111_v20 }
0x176b   :  { %2548 = vmatpush3.bf16.msra.mxu1 %v3040_v11  ;;  %2411 = vmatprep.mubr.msk.f32.mxu1 %vm2786_vm3, %v2784_v6 }
0x176c   :  { %2549 = vmatprep.subr.bf16.mxu1 %v2785_v9 }
0x176f   :  { %2551 = vmatpush3.bf16.msra.mxu1 %v3053_v15 }
0x1770   :  { %2558 = vmatprep.subr.bf16.mxu1 %v2785_v9 }
0x183d   :  { %v1161_v22 = vpop.f32.mrb[12].mxu1 }
0x183e   :  { %v3083_v24 = vadd.f32 %v2159_v53, %v1161_v22  ;;  %v2390_v25 = vpop.f32.mrb[13].mxu1 }
0x183f   :  { %v1164_v26 = vpop.f32.mrb[14].mxu1 }
0x1840   :  { %v1238_v27 = vadd.f32 %v1234_v21, %v3083_v24  ;;  %v3086_v28 = vadd.f32 %v2159_v53, %v1164_v26  ;;  %v2391_v29 = vpop.f32.mrb[15].mxu1 }
0x1842   :  { %2671 = vtanh.f32 %v1238_v27  ;;  %v2163_v32 = vmul.f32 -1.442695, %v1238_v27 }
0x1844   :  { %2673 = vpow2.f32 %v2163_v32 }
0x184c   :  { %v2672_v30 = vpop.eup %2671 }
0x184d   :  { %1248 = vrot.lane.b32.xlu0 %v2672_v30, %s2787_s25 }
0x184e   :  { %v2674_v33 = vpop.eup %2673 }
0x184f   :  { %v1242_v34 = vadd.f32 1.0, %v2674_v33 }
0x1851   :  { %2675 = vrcp.f32 %v1242_v34 }
0x185b   :  { %v2676_v36 = vpop.eup %2675 }
0x185c   :  { %v1246_v39 = vmul.f32 0.0, %v2676_v36 }
0x18bf   :  { %v1249_v37 = vpop.permute.xlu0 %1248 }
0x18c0   :  { %v1251_v38 = vmul.f32 %v2676_v36, %v1249_v37 }
0x18c2   :  { %1253 = vrot.lane.b32.xlu1 %v1251_v38, %s2788_s4 }
0x1934   :  { %v1254_v40 = vpop.permute.xlu1 %1253 }
0x1935   :  { %v1256_v41 = vadd.f32 %v1254_v40, %v1246_v39 }
0x1937   :  { %2677 = vtanh.f32 %v1256_v41  ;;  %v1350_v57 = vrot.slane %v1256_v41, 6 }
0x1941   :  { %v2678_v42 = vpop.eup %2677 }
0x1942   :  { %1259 = vrot.lane.b32.xlu0 %v2678_v42, %s2787_s25 }
0x19b4   :  { %v1260_v43 = vpop.permute.xlu0 %1259 }
0x19b5   :  { %v3091_v44 = vmul.f32 %v2676_v36, %v1260_v43 }
0x19b7   :  { %1264 = vrot.lane.b32.xlu1 %v3091_v44, %s2788_s4 }
0x1a29   :  { %v1265_v45 = vpop.permute.xlu1 %1264 }
0x1a2a   :  { %2412 = vmatmul.mubr.msk.f32.vlgmr.msra.gmra.mrb[16].mxu1 %vm230_vm5, %v1265_v45 }
0x1a2b   :  { %2560 = vmatpush3.bf16.msra.mxu1 %v3040_v11  ;;  %2433 = vmatprep.mubr.msk.f32.mxu1 %vm2786_vm3, %v2784_v6 }
0x1a2c   :  { %2561 = vmatprep.subr.bf16.mxu1 %v2785_v9 }
0x1a2f   :  { %2563 = vmatpush3.bf16.msra.mxu1 %v3053_v15 }
0x1a30   :  { %2570 = vmatprep.subr.bf16.mxu1 %v2785_v9 }
0x1afd   :  { %v1334_v46 = vpop.f32.mrb[16].mxu1 }
0x1afe   :  { %v1339_v47 = vrot.slane %v1334_v46, 6  ;;  %v2413_v48 = vpop.f32.mrb[17].mxu1 }
0x1b00   :  { %v1341_v49 = vadd.f32 %v1339_v47, %v3083_v24 }
0x1b02   :  { %2679 = vtanh.f32 %v1341_v49  ;;  %v2165_v50 = vmul.f32 -1.442695, %v1341_v49 }
0x1b04   :  { %2681 = vpow2.f32 %v2165_v50 }
0x1b0c   :  { %v2680_v31 = vpop.eup %2679 }
0x1b0d   :  { %1354 = vrot.lane.b32.xlu0 %v2680_v31, %s2787_s25 }
0x1b0e   :  { %v2682_v51 = vpop.eup %2681 }
0x1b0f   :  { %v1345_v52 = vadd.f32 1.0, %v2682_v51 }
0x1b11   :  { %2683 = vrcp.f32 %v1345_v52 }
0x1b1b   :  { %v2684_v54 = vpop.eup %2683 }
0x1b1c   :  { %v1352_v58 = vmul.f32 %v2684_v54, %v1350_v57 }
0x1b7f   :  { %v1355_v55 = vpop.permute.xlu0 %1354 }
0x1b80   :  { %v1357_v56 = vmul.f32 %v2684_v54, %v1355_v55 }
0x1b82   :  { %1359 = vrot.lane.b32.xlu1 %v1357_v56, %s2788_s4 }
0x1bf4   :  { %v1360_v59 = vpop.permute.xlu1 %1359 }
0x1bf5   :  { %v1362_v60 = vadd.f32 %v1360_v59, %v1352_v58 }
0x1bf7   :  { %2685 = vtanh.f32 %v1362_v60  ;;  %v1457_v18 = vrot.slane %v1362_v60, 6 }
0x1c01   :  { %v2686_v61 = vpop.eup %2685 }
0x1c02   :  { %1365 = vrot.lane.b32.xlu0 %v2686_v61, %s2787_s25 }
0x1c74   :  { %v1366_v62 = vpop.permute.xlu0 %1365 }
0x1c75   :  { %v1368_v63 = vmul.f32 %v2684_v54, %v1366_v62 }
0x1c77   :  { %v1370_v0 = vrot.slane %v1368_v63, 2  ;;  %v2019_v25 = vsel %vm1084_vm6, %v3091_v44, %v1368_v63 }
0x1c79   :  { %1371 = vrot.lane.b32.xlu1 %v1370_v0, %s2788_s4 }
0x1ceb   :  { %v1372_v1 = vpop.permute.xlu1 %1371 }
0x1cec   :  { %2423 = vmatmul.mubr.msk.f32.vlgmr.msra.gmra.mrb[12].mxu0 %vm230_vm5, %v1372_v1 }
0x1ced   :  { %2566 = vmatpush3.bf16.msra.mxu0 %v3040_v11  ;;  %2444 = vmatprep.mubr.msk.f32.mxu0 %vm2786_vm3, %v2784_v6 }
0x1cee   :  { %2567 = vmatprep.subr.bf16.mxu0 %v2785_v9 }
0x1cf1   :  { %2569 = vmatpush3.bf16.msra.mxu0 %v3053_v15 }
0x1cf2   :  { %2576 = vmatprep.subr.bf16.mxu0 %v2785_v9 }
0x1dbf   :  { %v1441_v2 = vpop.f32.mrb[12].mxu0 }
0x1dc0   :  { %v1446_v3 = vrot.slane %v1441_v2, 4  ;;  %v2424_v4 = vpop.f32.mrb[13].mxu0 }
0x1dc2   :  { %v1448_v35 = vadd.f32 %v1446_v3, %v3083_v24 }
0x1dc4   :  { %2687 = vtanh.f32 %v1448_v35  ;;  %v2167_v8 = vmul.f32 -1.442695, %v1448_v35 }
0x1dc6   :  { %2689 = vpow2.f32 %v2167_v8 }
0x1dce   :  { %v2688_v7 = vpop.eup %2687 }
0x1dcf   :  { %1461 = vrot.lane.b32.xlu0 %v2688_v7, %s2787_s25 }
0x1dd0   :  { %v2690_v12 = vpop.eup %2689 }
0x1dd1   :  { %v1452_v13 = vadd.f32 1.0, %v2690_v12 }
0x1dd3   :  { %2691 = vrcp.f32 %v1452_v13 }
0x1ddd   :  { %v2692_v14 = vpop.eup %2691 }
0x1dde   :  { %v1459_v19 = vmul.f32 %v2692_v14, %v1457_v18 }
0x1e41   :  { %v1462_v16 = vpop.permute.xlu0 %1461 }
0x1e42   :  { %v1464_v17 = vmul.f32 %v2692_v14, %v1462_v16 }
0x1e44   :  { %1466 = vrot.lane.b32.xlu1 %v1464_v17, %s2788_s4 }
0x1eb6   :  { %v1467_v20 = vpop.permute.xlu1 %1466 }
0x1eb7   :  { %v1469_v21 = vadd.f32 %v1467_v20, %v1459_v19 }
0x1eb9   :  { %2693 = vtanh.f32 %v1469_v21  ;;  %v1564_v43 = vrot.slane %v1469_v21, 6 }
0x1ec3   :  { %v2694_v23 = vpop.eup %2693 }
0x1ec4   :  { %1472 = vrot.lane.b32.xlu0 %v2694_v23, %s2787_s25 }
0x1f36   :  { %v1473_v53 = vpop.permute.xlu0 %1472 }
0x1f37   :  { %v1475_v22 = vmul.f32 %v2692_v14, %v1473_v53 }
0x1f39   :  { %v1477_v26 = vrot.slane %v1475_v22, 4  ;;  %v2020_v27 = vsel %vm1086_vm7, %v2019_v25, %v1475_v22 }
0x1f3b   :  { %1478 = vrot.lane.b32.xlu1 %v1477_v26, %s2788_s4 }
0x1fad   :  { %v1479_v29 = vpop.permute.xlu1 %1478 }
0x1fae   :  { %2434 = vmatmul.mubr.msk.f32.vlgmr.msra.gmra.mrb[18].mxu1 %vm230_vm5, %v1479_v29 }
0x1faf   :  { %2572 = vmatpush3.bf16.msra.mxu1 %v3040_v11  ;;  %2455 = vmatprep.mubr.msk.f32.mxu1 %vm2786_vm3, %v2784_v6 }
0x1fb0   :  { %2573 = vmatprep.subr.bf16.mxu1 %v2785_v9 }
0x1fb3   :  { %2575 = vmatpush3.bf16.msra.mxu1 %v3053_v15 }
0x1fb4   :  { %2582 = vmatprep.subr.bf16.mxu1 %v2785_v9 }
0x2081   :  { %v1548_v30 = vpop.f32.mrb[18].mxu1 }
0x2082   :  { %v1553_v32 = vrot.slane %v1548_v30, 2  ;;  %v2435_v33 = vpop.f32.mrb[19].mxu1 }
0x2084   :  { %v1555_v34 = vadd.f32 %v1553_v32, %v3083_v24 }
0x2086   :  { %2695 = vtanh.f32 %v1555_v34  ;;  %v2169_v37 = vmul.f32 -1.442695, %v1555_v34 }
0x2088   :  { %2697 = vpow2.f32 %v2169_v37 }
0x2090   :  { %v2696_v36 = vpop.eup %2695 }
0x2091   :  { %1568 = vrot.lane.b32.xlu0 %v2696_v36, %s2787_s25 }
0x2092   :  { %v2698_v38 = vpop.eup %2697 }
0x2093   :  { %v1559_v39 = vadd.f32 1.0, %v2698_v38 }
0x2095   :  { %2699 = vrcp.f32 %v1559_v39 }
0x209f   :  { %v2700_v40 = vpop.eup %2699 }
0x20a0   :  { %v1566_v44 = vmul.f32 %v2700_v40, %v1564_v43 }
0x2103   :  { %v1569_v41 = vpop.permute.xlu0 %1568 }
0x2104   :  { %v1571_v42 = vmul.f32 %v2700_v40, %v1569_v41 }
0x2106   :  { %1573 = vrot.lane.b32.xlu1 %v1571_v42, %s2788_s4 }
0x2178   :  { %v1574_v45 = vpop.permute.xlu1 %1573 }
0x2179   :  { %v1576_v46 = vadd.f32 %v1574_v45, %v1566_v44 }
0x217b   :  { %2701 = vtanh.f32 %v1576_v46  ;;  %v1668_v62 = vrot.slane %v1576_v46, 6 }
0x2185   :  { %v2702_v24 = vpop.eup %2701 }
0x2186   :  { %1579 = vrot.lane.b32.xlu0 %v2702_v24, %s2787_s25 }
0x21f8   :  { %v1580_v47 = vpop.permute.xlu0 %1579 }
0x21f9   :  { %v1582_v48 = vmul.f32 %v2700_v40, %v1580_v47 }
0x21fb   :  { %v1584_v49 = vrot.slane %v1582_v48, 6  ;;  %v3134_v31 = vsel %vm1088_vm8, %v2020_v27, %v1582_v48 }
0x21fd   :  { %1585 = vrot.lane.b32.xlu1 %v1584_v49, %s2788_s4 }
0x226f   :  { %v1586_v50 = vpop.permute.xlu1 %1585 }
0x2270   :  { %2445 = vmatmul.mubr.msk.f32.vlgmr.msra.gmra.mrb[14].mxu0 %vm230_vm5, %v1586_v50 }
0x2271   :  { %2578 = vmatpush3.bf16.msra.mxu0 %v3040_v11  ;;  %2466 = vmatprep.mubr.msk.f32.mxu0 %vm2786_vm3, %v2784_v6 }
0x2272   :  { %2579 = vmatprep.subr.bf16.mxu0 %v2785_v9 }
0x2275   :  { %2581 = vmatpush3.bf16.msra.mxu0 %v3053_v15 }
0x2276   :  { %2480 = vmatprep.subr.bf16.mxu0 %v2784_v6 }
0x2343   :  { %v1655_v51 = vpop.f32.mrb[14].mxu0 }
0x2344   :  { %v1659_v52 = vadd.f32 %v1655_v51, %v3086_v28  ;;  %v2446_v54 = vpop.f32.mrb[15].mxu0 }
0x2346   :  { %2703 = vtanh.f32 %v1659_v52  ;;  %v2171_v56 = vmul.f32 -1.442695, %v1659_v52 }
0x2348   :  { %2705 = vpow2.f32 %v2171_v56 }
0x2350   :  { %v2704_v55 = vpop.eup %2703 }
0x2351   :  { %1672 = vrot.lane.b32.xlu0 %v2704_v55, %s2787_s25 }
0x2352   :  { %v2706_v57 = vpop.eup %2705 }
0x2353   :  { %v1663_v58 = vadd.f32 1.0, %v2706_v57 }
0x2355   :  { %2707 = vrcp.f32 %v1663_v58 }
0x235f   :  { %v2708_v59 = vpop.eup %2707 }
0x2360   :  { %v1670_v63 = vmul.f32 %v2708_v59, %v1668_v62 }
0x23c3   :  { %v1673_v60 = vpop.permute.xlu0 %1672 }
0x23c4   :  { %v1675_v61 = vmul.f32 %v2708_v59, %v1673_v60 }
0x23c6   :  { %1677 = vrot.lane.b32.xlu1 %v1675_v61, %s2788_s4 }
0x2438   :  { %v1678_v0 = vpop.permute.xlu1 %1677 }
0x2439   :  { %v1680_v1 = vadd.f32 %v1678_v0, %v1670_v63 }
0x243b   :  { %2709 = vtanh.f32 %v1680_v1 }
0x2445   :  { %v2710_v2 = vpop.eup %2709 }
0x2446   :  { %1683 = vrot.lane.b32.xlu0 %v2710_v2, %s2787_s25 }
0x24b8   :  { %v1684_v3 = vpop.permute.xlu0 %1683 }
0x24b9   :  { %v3148_v4 = vmul.f32 %v2708_v59, %v1684_v3 }
0x24bb   :  { %1688 = vrot.lane.b32.xlu1 %v3148_v4, %s2788_s4 }
0x252d   :  { %v1689_v35 = vpop.permute.xlu1 %1688 }
0x252e   :  { %2456 = vmatmul.mubr.msk.f32.vlgmr.msra.gmra.mrb[20].mxu1 %vm230_vm5, %v1689_v35  ;;  %v2606_v35 = vld [vmem:[%s3243_s8 + $0x8] sm:$0xff]  }
0x252f   :  { %2584 = vmatpush3.bf16.msra.mxu1 %v3040_v11  ;;  %2477 = vmatprep.mubr.msk.f32.mxu1 %vm2786_vm3, %v2784_v6 }
0x2530   :  { %2585 = vmatprep.subr.bf16.mxu1 %v2785_v9  ;;  %v1774_v9 = vrot.slane %v1680_v1, 6 }
0x2533   :  { %2587 = vmatpush3.bf16.msra.mxu1 %v3053_v15 }
0x2601   :  { %v1758_v7 = vpop.f32.mrb[20].mxu1 }
0x2602   :  { %v1763_v8 = vrot.slane %v1758_v7, 6  ;;  %v2457_v12 = vpop.f32.mrb[21].mxu1 }
0x2604   :  { %v1765_v13 = vadd.f32 %v1763_v8, %v3086_v28 }
0x2606   :  { %2711 = vtanh.f32 %v1765_v13  ;;  %v2173_v16 = vmul.f32 -1.442695, %v1765_v13 }
0x2608   :  { %2713 = vpow2.f32 %v2173_v16 }
0x2610   :  { %v2712_v14 = vpop.eup %2711 }
0x2611   :  { %1778 = vrot.lane.b32.xlu0 %v2712_v14, %s2787_s25 }
0x2612   :  { %v2714_v17 = vpop.eup %2713 }
0x2613   :  { %v1769_v11 = vadd.f32 1.0, %v2714_v17 }
0x2615   :  { %2715 = vrcp.f32 %v1769_v11 }
0x261f   :  { %v2716_v18 = vpop.eup %2715 }
0x2620   :  { %v1776_v15 = vmul.f32 %v2716_v18, %v1774_v9 }
0x2683   :  { %v1779_v19 = vpop.permute.xlu0 %1778 }
0x2684   :  { %v1781_v20 = vmul.f32 %v2716_v18, %v1779_v19 }
0x2686   :  { %1783 = vrot.lane.b32.xlu1 %v1781_v20, %s2788_s4 }
0x26f8   :  { %v1784_v21 = vpop.permute.xlu1 %1783 }
0x26f9   :  { %v1786_v23 = vadd.f32 %v1784_v21, %v1776_v15 }
0x26fb   :  { %2717 = vtanh.f32 %v1786_v23  ;;  %v1881_v42 = vrot.slane %v1786_v23, 6 }
0x2705   :  { %v2718_v53 = vpop.eup %2717 }
0x2706   :  { %1789 = vrot.lane.b32.xlu0 %v2718_v53, %s2787_s25 }
0x2778   :  { %v1790_v22 = vpop.permute.xlu0 %1789 }
0x2779   :  { %v1792_v25 = vmul.f32 %v2716_v18, %v1790_v22 }
0x277b   :  { %v1794_v26 = vrot.slane %v1792_v25, 2  ;;  %v2022_v48 = vsel %vm1084_vm6, %v3148_v4, %v1792_v25  ;;  %v2605_v4 = vld [vmem:[%s3243_s8] sm:$0xff]   ;;  %s2790_s8 = smov [#allocation2]  }
0x277c   :  { %s2105_s22 = sshll.u32 %s2790_s8, 4  ;;  %s2106_s22 = int_to_ptr.vmem [resolvable:$true] %s2105_s22 }
0x277d   :  { %1795 = vrot.lane.b32.xlu1 %v1794_v26, %s2788_s4  ;;  %s2735_s2 = scalar_lea.vmem %s2106_s22, 64  ;;  %p2740_p1 = scmp.lt.s32.totalorder %s2106_s22, %s2106_s22 }
0x277e   :  { %p2736_p0 = scmp.ne.s32.totalorder %s2106_s22, %s2735_s2  ;;  %p2741_p2 = scmp.lt.s32.totalorder %s2735_s2, %s2735_s2 }
0x2780   :  { %p2742_p3 = por %p2741_p2, %p2740_p1 }
0x2782   :  { %p2743_p4 = pnand %p2742_p3, %p2736_p0 }
0x27ef   :  { %v1796_v27 = vpop.permute.xlu1 %1795 }
0x27f0   :  { %2467 = vmatmul.mubr.msk.f32.vlgmr.msra.gmra.mrb[16].mxu0 %vm230_vm5, %v1796_v27 }
0x27f1   :  { %2484 = vmatprep.mubr.msk.bf16.mxu0 %vm2786_vm3, %v2784_v6  ;;  %2481 = vmatpush3.bf16.msra.mxu0 %v2605_v4 }
0x27f2   :  { %2482 = vmatprep.subr.bf16.mxu0 %v2784_v6 }
0x27f5   :  { %2483 = vmatpush3.bf16.msra.mxu0 %v2606_v35 }
0x28c3   :  { %v1865_v29 = vpop.f32.mrb[16].mxu0 }
0x28c4   :  { %v1870_v30 = vrot.slane %v1865_v29, 4  ;;  %v2468_v32 = vpop.f32.mrb[17].mxu0 }
0x28c6   :  { %v1872_v33 = vadd.f32 %v1870_v30, %v3086_v28 }
0x28c8   :  { %2719 = vtanh.f32 %v1872_v33  ;;  %v2175_v36 = vmul.f32 -1.442695, %v1872_v33 }
0x28ca   :  { %2721 = vpow2.f32 %v2175_v36 }
0x28d2   :  { %v2720_v34 = vpop.eup %2719 }
0x28d3   :  { %1885 = vrot.lane.b32.xlu0 %v2720_v34, %s2787_s25 }
0x28d4   :  { %v2722_v37 = vpop.eup %2721 }
0x28d5   :  { %v1876_v38 = vadd.f32 1.0, %v2722_v37 }
0x28d7   :  { %2723 = vrcp.f32 %v1876_v38 }
0x28e1   :  { %v2724_v39 = vpop.eup %2723 }
0x28e2   :  { %v1883_v43 = vmul.f32 %v2724_v39, %v1881_v42 }
0x2945   :  { %v1886_v40 = vpop.permute.xlu0 %1885 }
0x2946   :  { %v1888_v41 = vmul.f32 %v2724_v39, %v1886_v40 }
0x2948   :  { %1890 = vrot.lane.b32.xlu1 %v1888_v41, %s2788_s4 }
0x29ba   :  { %v1891_v44 = vpop.permute.xlu1 %1890 }
0x29bb   :  { %v1893_v45 = vadd.f32 %v1891_v44, %v1883_v43 }
0x29bd   :  { %2725 = vtanh.f32 %v1893_v45  ;;  %v1988_v0 = vrot.slane %v1893_v45, 6 }
0x29c7   :  { %v2726_v46 = vpop.eup %2725 }
0x29c8   :  { %1896 = vrot.lane.b32.xlu0 %v2726_v46, %s2787_s25 }
0x2a3a   :  { %v1897_v24 = vpop.permute.xlu0 %1896 }
0x2a3b   :  { %v1899_v47 = vmul.f32 %v2724_v39, %v1897_v24 }
0x2a3d   :  { %v1901_v49 = vrot.slane %v1899_v47, 4  ;;  %v2023_v50 = vsel %vm1086_vm7, %v2022_v48, %v1899_v47 }
0x2a3f   :  { %1902 = vrot.lane.b32.xlu1 %v1901_v49, %s2788_s4 }
0x2ab1   :  { %v1903_v51 = vpop.permute.xlu1 %1902 }
0x2ab2   :  { %2478 = vmatmul.mubr.msk.f32.vlgmr.msra.gmra.mrb[22].mxu1 %vm230_vm5, %v1903_v51 }
0x2b85   :  { %v1972_v52 = vpop.f32.mrb[22].mxu1 }
0x2b86   :  { %v1977_v54 = vrot.slane %v1972_v52, 2  ;;  %v2479_v55 = vpop.f32.mrb[23].mxu1 }
0x2b88   :  { %v1979_v56 = vadd.f32 %v1977_v54, %v3086_v28 }
0x2b8a   :  { %2727 = vtanh.f32 %v1979_v56  ;;  %v2177_v58 = vmul.f32 -1.442695, %v1979_v56 }
0x2b8c   :  { %2729 = vpow2.f32 %v2177_v58 }
0x2b94   :  { %v2728_v57 = vpop.eup %2727 }
0x2b95   :  { %1992 = vrot.lane.b32.xlu0 %v2728_v57, %s2787_s25 }
0x2b96   :  { %v2730_v59 = vpop.eup %2729 }
0x2b97   :  { %v1983_v60 = vadd.f32 1.0, %v2730_v59 }
0x2b99   :  { %2731 = vrcp.f32 %v1983_v60 }
0x2ba3   :  { %v2732_v61 = vpop.eup %2731 }
0x2ba4   :  { %v1990_v1 = vmul.f32 %v2732_v61, %v1988_v0 }
0x2c07   :  { %v1993_v62 = vpop.permute.xlu0 %1992 }
0x2c08   :  { %v1995_v63 = vmul.f32 %v2732_v61, %v1993_v62 }
0x2c0a   :  { %1997 = vrot.lane.b32.xlu1 %v1995_v63, %s2788_s4 }
0x2c7c   :  { %v1998_v2 = vpop.permute.xlu1 %1997 }
0x2c7d   :  { %v2000_v3 = vadd.f32 %v1998_v2, %v1990_v1 }
0x2c7f   :  { %2733 = vtanh.f32 %v2000_v3 }
0x2c89   :  { %v2734_v28 = vpop.eup %2733 }
0x2c8a   :  { %2003 = vrot.lane.b32.xlu0 %v2734_v28, %s2787_s25 }
0x2c8e   :  { %1074 = vrot.lane.b32.xlu0 %v3067_v10, %s2788_s4 }
0x2cfc   :  { %v2004_v7 = vpop.permute.xlu0 %2003 }
0x2cfd   :  { %v2006_v8 = vmul.f32 %v2732_v61, %v2004_v7 }
0x2cff   :  { %2008 = vrot.lane.b32.xlu0 %v2006_v8, %s2788_s4  ;;  %v2024_v12 = vsel %vm1088_vm8, %v2023_v50, %v2006_v8 }
0x2d00   :  { %v1075_v13 = vpop.permute.xlu0 %1074  ;;  %v2025_v14 = vpack.c.bf16 %v2024_v12, %v3134_v31 }
0x2d01   :  { %1078 = vst.msk [vmem:[#allocation2 - $0x6] sm:$0xc0] %vm1077_vm9, %v1075_v13 }
0x2d02   :  { %2038 = vrot.lane.b32.xlu1 %v2025_v14, %s2788_s4 }
0x2d06   :  { %1080 = vrot.lane.b32.xlu1 %v3028_v5, %s2789_s21 }
0x2d0a   :  { %2014 = vrot.lane.b32.xlu1 %v2000_v3, %s2789_s21 }
0x2d71   :  { %v2009_v6 = vpop.permute.xlu0 %2008 }
0x2d72   :  { %2012 = vst.msk [vmem:[#allocation2 - $0x4] sm:$0xc0] %vm1077_vm9, %v2009_v6 }
0x2d74   :  { %v2039_v10 = vpop.permute.xlu1 %2038 }
0x2d75   :  { %2485 = vmatmul.mubr.msk.bf16.vlgmr.msra.gmra.mrb[20].mxu0 %vm230_vm5, %v2039_v10 }
0x2d78   :  { %v1081_v16 = vpop.permute.xlu1 %1080 }
0x2d79   :  { %1083 = vst.msk [vmem:[#allocation4 - $0x6] sm:$0xc0] %vm1077_vm9, %v1081_v16 }
0x2d7c   :  { %v2015_v17 = vpop.permute.xlu1 %2014 }
0x2d7d   :  { %2018 = vst.msk [vmem:[#allocation4 - $0x4] sm:$0xc0] %vm1077_vm9, %v2015_v17 }
0x2d7e   :  { %2746 = shalt.err (!%p2743_p4)
}
0x2d7f   :  { %s2747_s26 = scalar_lea.hbm %s3246_s11, 64 }
0x2d80   :  { %p2748_p5 = scmp.ne.s32.totalorder %s3246_s11, %s2747_s26  ;;  %p2751_p6 = scmp.lt.u32.totalorder %s2747_s26, %s3246_s11 }
0x2d82   :  { %p2753_p7 = pnand %p2751_p6, %p2748_p5 }
0x2d84   :  { %2756 = shalt.err (!%p2753_p7)
}
0x2d85   :  { %s2792_s13 = smov 2   ;;  %s2757_s1 = scalar_lea.vmem %s2118_s24, 64 }
0x2d86   :  { %2111 = dma.vmem_to_hbm [thread:$0]  %s2106_s22, 64, %s3246_s11, [#allocation3], %s2788_s4, %s2788_s4, %s2792_s13  }
0x2d87   :  { %p2758_p8 = scmp.ne.s32.totalorder %s2118_s24, %s2757_s1  ;;  %p2762_p9 = scmp.lt.s32.totalorder %s2118_s24, %s2118_s24 }
0x2d88   :  { %p2763_p10 = scmp.lt.s32.totalorder %s2757_s1, %s2757_s1 }
0x2d8a   :  { %p2764_p11 = por %p2763_p10, %p2762_p9 }
0x2d8c   :  { %p2765_p12 = pnand %p2764_p11, %p2758_p8 }
0x2d8e   :  { %2768 = shalt.err (!%p2765_p12)
}
0x2d8f   :  { %s2769_s17 = scalar_lea.hbm %s3247_s12, 64 }
0x2d90   :  { %p2770_p13 = scmp.ne.s32.totalorder %s3247_s12, %s2769_s17  ;;  %p2773_p0 = scmp.lt.u32.totalorder %s2769_s17, %s3247_s12 }
0x2d92   :  { %p2775_p1 = pnand %p2773_p0, %p2770_p13 }
0x2d94   :  { %2778 = shalt.err (!%p2775_p1)
}
0x2d95   :  { %2123 = dma.vmem_to_hbm [thread:$0]  %s2118_s24, 64, %s3247_s12, [#allocation5], %s2788_s4, %s2788_s4, %s2792_s13  }
0x2d96   :  { %v2178_v5 = vld [vmem:[%s3244_s9] ss:$0 sm:$0xff] }
0x2e48   :  { %v2089_v31 = vpop.f32.mrb[20].mxu0 }
0x2e49   :  { %v2090_v11 = vadd.f32 %v2178_v5, %v2089_v31  ;;  %v2486_v18 = vpop.f32.mrb[21].mxu0 }
0x2e4a   :  { %v2092_v19 = vpop.f32.mrb[22].mxu0 }
0x2e4b   :  { %2096 = vst [vmem:[%s3245_s10] sm:$0xff] %v2090_v11  ;;  %v2093_v20 = vadd.f32 %v2178_v5, %v2092_v19  ;;  %v2487_v9 = vpop.f32.mrb[23].mxu0 }
0x2e4d   :  { %2097 = vst [vmem:[%s3245_s10 + $0x8] sm:$0xff] %v2093_v20 }
0x2e4e   :  { %2779 = dma.done.wait [#allocation3], 64  }
0x2e4f   :  { %2780 = vsyncadd [#allocation3], 4294967232 }
0x2e50   :  { %2781 = dma.done.wait [#allocation5], 64  }
0x2e51   :  { %2782 = vsyncadd [#allocation5], 4294967232 }
0x2e52   :  { %2132 = vsyncpa [#allocation3], 1 }
0x2e53   :  { %2133 = vsyncpa [#allocation5], 1 }

</bundles_post_ra>
